<compile_context>
chip_gen: v6e
topology: v6e:2x2x1
jax: 0.10.0
libtpu: 0.0.40
codegen_flags: <defaults>
</compile_context>

<pallas_src>
import functools

import jax
import jax.numpy as jnp
from jax.experimental import pallas as pl
from jax.experimental.pallas import tpu as pltpu


# -----------------------------------------------------------------------------
# Fused kernel: proj(x1), proj(x2), cross-correlation, Barlow-Twins loss.
# -----------------------------------------------------------------------------
def fused_barlowtwins_kernel(*refs, num_layers, lambd, eps):
    """refs = (x1, x2, w_0 .. w_{L-1}, out). Everything resident in VMEM."""
    x1_ref, x2_ref = refs[0], refs[1]
    w_refs = refs[2:2 + num_layers]
    o_ref = refs[2 + num_layers]

    def proj(h):
        # h: (N, C) float32
        for idx, w_ref in enumerate(w_refs):
            # Linear (no bias): bf16 operands, f32 accumulation on the MXU.
            y = jnp.dot(h.astype(jnp.bfloat16), w_ref[...],
                        preferred_element_type=jnp.float32)
            # BatchNorm1d, training mode: batch stats, biased variance,
            # gamma=1 / beta=0 (affine=False on the last layer is identical).
            mean = jnp.mean(y, axis=0, keepdims=True)
            var = jnp.maximum(
                jnp.mean(y * y, axis=0, keepdims=True) - mean * mean, 0.0)
            y = (y - mean) * jax.lax.rsqrt(var + eps)
            if idx < num_layers - 1:
                y = jnp.maximum(y, 0.0)          # ReLU on all but the last layer
            h = y
        return h

    p1 = proj(x1_ref[...].astype(jnp.float32))
    p2 = proj(x2_ref[...].astype(jnp.float32))

    n = x1_ref.shape[0]
    # c = p1.T @ p2 / N  (contract over the batch axis), f32 accumulation.
    c = jax.lax.dot_general(
        p1.astype(jnp.bfloat16), p2.astype(jnp.bfloat16),
        dimension_numbers=(((0,), (0,)), ((), ())),
        preferred_element_type=jnp.float32) * (1.0 / n)

    d = c.shape[0]
    row = jax.lax.broadcasted_iota(jnp.int32, (d, d), 0)
    col = jax.lax.broadcasted_iota(jnp.int32, (d, d), 1)
    contrib = jnp.where(row == col, (c - 1.0) ** 2, lambd * (c * c))
    o_ref[...] = jnp.sum(contrib, keepdims=True)     # (1, 1) f32


def barlowtwins_forward(x1, x2, weights, *, lambd, eps=1e-5):
    """Fused BarlowTwins head forward. weights: list of [C_in, C_out] f32 arrays."""
    assert x1.ndim == 2 and x1.shape == x2.shape
    num_layers = len(weights)
    # Pre-cast weights to bf16: halves weight DMA; the MXU is bf16-native.
    w_bf16 = [w.astype(jnp.bfloat16) for w in weights]
    kernel = functools.partial(fused_barlowtwins_kernel,
                               num_layers=num_layers, lambd=lambd, eps=eps)
    vmem = pltpu.MemorySpace.VMEM
    out = pl.pallas_call(
        kernel,
        out_shape=jax.ShapeDtypeStruct((1, 1), jnp.float32),
        in_specs=[pl.BlockSpec(memory_space=vmem)] * (2 + num_layers),
        out_specs=pl.BlockSpec(memory_space=vmem),
    )(x1, x2, *w_bf16)
    return out[0, 0]


# -----------------------------------------------------------------------------
# BarlowTwinsHead wrapper
# -----------------------------------------------------------------------------
class BarlowTwinsHead:
    """JAX/Pallas port of the PyTorch BarlowTwinsHead (forward pass only)."""

    def __init__(self, in_channels=128, out_channels=256, proj_layers=3,
                 lambd=0.005, seed=0):
        self.lambd = lambd
        key = jax.random.PRNGKey(seed)
        # Linear weights stored as [C_in, C_out] (transposed vs torch [out, in]).
        self.weights = []
        c_in = in_channels
        for _ in range(proj_layers - 1):
            key, sub = jax.random.split(key)
            self.weights.append(
                0.02 * jax.random.normal(sub, (c_in, out_channels), jnp.float32))
            c_in = out_channels
        key, sub = jax.random.split(key)
        self.weights.append(
            0.02 * jax.random.normal(sub, (out_channels, out_channels), jnp.float32))

    def forward(self, x1, x2):
        # TODO(synk): multi-crop list inputs and the cross-GPU all_reduce path of
        # the original module are not implemented (single-tensor, single-device).
        loss = barlowtwins_forward(x1, x2, self.weights, lambd=self.lambd)
        return {"barlowtwins": loss, "loss": loss}


# -----------------------------------------------------------------------------
# Pure-JAX reference (same math: bf16 matmul operands, f32 accumulation)
# -----------------------------------------------------------------------------
def _ref_forward(head, x1, x2, eps=1e-5):
    num_layers = len(head.weights)

    def proj(h):
        for idx, w in enumerate(head.weights):
            y = jnp.dot(h.astype(jnp.bfloat16), w.astype(jnp.bfloat16),
                        preferred_element_type=jnp.float32)
            mean = jnp.mean(y, axis=0, keepdims=True)
            var = jnp.maximum(
                jnp.mean(y * y, axis=0, keepdims=True) - mean * mean, 0.0)
            y = (y - mean) * jax.lax.rsqrt(var + eps)
            if idx < num_layers - 1:
                y = jnp.maximum(y, 0.0)
            h = y
        return h

    p1 = proj(x1)
    p2 = proj(x2)
    n = p1.shape[0]
    c = jax.lax.dot_general(
        p1.astype(jnp.bfloat16), p2.astype(jnp.bfloat16),
        dimension_numbers=(((0,), (0,)), ((), ())),
        preferred_element_type=jnp.float32) / n
    d = c.shape[0]
    on_diag = jnp.sum((jnp.diagonal(c) - 1.0) ** 2)
    off_diag = jnp.sum((c * (1.0 - jnp.eye(d, dtype=c.dtype))) ** 2)
    return on_diag + head.lambd * off_diag


if __name__ == "__main__":
    N, C_IN, C_OUT = 8, 128, 256
    key = jax.random.PRNGKey(0)
    k1, k2 = jax.random.split(key)
    x1 = jax.random.normal(k1, (N, C_IN), jnp.float32)
    x2 = jax.random.normal(k2, (N, C_IN), jnp.float32)

    head = BarlowTwinsHead(in_channels=C_IN, out_channels=C_OUT,
                           proj_layers=3, lambd=0.005, seed=0)

    out = head.forward(x1, x2)
    loss = jax.block_until_ready(out["loss"])

    ref = _ref_forward(head, x1, x2)
    assert jnp.allclose(loss, ref, rtol=1e-3, atol=1e-3), (loss, ref)

    print("KERNEL_OK")
</pallas_src>

<mosaic_0001>
module attributes {stable_mosaic.version = 11 : i64} {
  func.func @fused_barlowtwins_kernel(%arg0: memref<8x128xf32, #tpu.memory_space<vmem>>, %arg1: memref<8x128xf32, #tpu.memory_space<vmem>>, %arg2: memref<128x256xbf16, #tpu.memory_space<vmem>>, %arg3: memref<256x256xbf16, #tpu.memory_space<vmem>>, %arg4: memref<256x256xbf16, #tpu.memory_space<vmem>>, %arg5: memref<1x1xf32, #tpu.memory_space<vmem>>) attributes {dimension_semantics = [], scalar_prefetch = 0 : i64, scratch_operands = 0 : i64, tpu.core_type = #tpu.core_type<tc>} {
    %c0 = arith.constant 0 : index
    %c0_0 = arith.constant 0 : index
    %0 = vector.load %arg0[%c0, %c0_0] : memref<8x128xf32, #tpu.memory_space<vmem>>, vector<8x128xf32>
    %1 = arith.truncf %0 : vector<8x128xf32> to vector<8x128xbf16>
    %c0_1 = arith.constant 0 : index
    %c0_2 = arith.constant 0 : index
    %2 = vector.load %arg2[%c0_1, %c0_2] : memref<128x256xbf16, #tpu.memory_space<vmem>>, vector<128x256xbf16>
    %cst = arith.constant dense<0.000000e+00> : vector<8x256xf32>
    %3 = tpu.matmul %1, %2, %cst {dimension_numbers = #tpu.dot_dimension_numbers<[1], [0], [0], [1], [0, 0, 1, 1], [], []>} : vector<8x128xbf16>, vector<128x256xbf16>, vector<8x256xf32> -> vector<8x256xf32>
    %cst_3 = arith.constant dense<0.000000e+00> : vector<256xf32>
    %4 = vector.multi_reduction <add>, %3, %cst_3 [0] : vector<8x256xf32> to vector<256xf32>
    %5 = vector.shape_cast %4 : vector<256xf32> to vector<1x256xf32>
    %cst_4 = arith.constant 8.000000e+00 : f32
    %6 = vector.broadcast %cst_4 : f32 to vector<1x256xf32>
    %7 = arith.divf %5, %6 : vector<1x256xf32>
    %8 = arith.mulf %3, %3 : vector<8x256xf32>
    %cst_5 = arith.constant dense<0.000000e+00> : vector<256xf32>
    %9 = vector.multi_reduction <add>, %8, %cst_5 [0] : vector<8x256xf32> to vector<256xf32>
    %10 = vector.shape_cast %9 : vector<256xf32> to vector<1x256xf32>
    %cst_6 = arith.constant 8.000000e+00 : f32
    %11 = vector.broadcast %cst_6 : f32 to vector<1x256xf32>
    %12 = arith.divf %10, %11 : vector<1x256xf32>
    %13 = arith.mulf %7, %7 : vector<1x256xf32>
    %14 = arith.subf %12, %13 : vector<1x256xf32>
    %cst_7 = arith.constant 0.000000e+00 : f32
    %15 = vector.broadcast %cst_7 : f32 to vector<1x256xf32>
    %16 = arith.maximumf %14, %15 : vector<1x256xf32>
    %17 = vector.broadcast %7 : vector<1x256xf32> to vector<8x256xf32>
    %18 = arith.subf %3, %17 : vector<8x256xf32>
    %cst_8 = arith.constant 9.99999974E-6 : f32
    %19 = vector.broadcast %cst_8 : f32 to vector<1x256xf32>
    %20 = arith.addf %16, %19 : vector<1x256xf32>
    %21 = math.rsqrt %20 : vector<1x256xf32>
    %22 = vector.broadcast %21 : vector<1x256xf32> to vector<8x256xf32>
    %23 = arith.mulf %18, %22 : vector<8x256xf32>
    %cst_9 = arith.constant 0.000000e+00 : f32
    %24 = vector.broadcast %cst_9 : f32 to vector<8x256xf32>
    %25 = arith.maximumf %23, %24 : vector<8x256xf32>
    %26 = arith.truncf %25 : vector<8x256xf32> to vector<8x256xbf16>
    %c0_10 = arith.constant 0 : index
    %c0_11 = arith.constant 0 : index
    %27 = vector.load %arg3[%c0_10, %c0_11] : memref<256x256xbf16, #tpu.memory_space<vmem>>, vector<256x256xbf16>
    %cst_12 = arith.constant dense<0.000000e+00> : vector<8x256xf32>
    %28 = tpu.matmul %26, %27, %cst_12 {dimension_numbers = #tpu.dot_dimension_numbers<[1], [0], [0], [1], [0, 0, 1, 1], [], []>} : vector<8x256xbf16>, vector<256x256xbf16>, vector<8x256xf32> -> vector<8x256xf32>
    %cst_13 = arith.constant dense<0.000000e+00> : vector<256xf32>
    %29 = vector.multi_reduction <add>, %28, %cst_13 [0] : vector<8x256xf32> to vector<256xf32>
    %30 = vector.shape_cast %29 : vector<256xf32> to vector<1x256xf32>
    %cst_14 = arith.constant 8.000000e+00 : f32
    %31 = vector.broadcast %cst_14 : f32 to vector<1x256xf32>
    %32 = arith.divf %30, %31 : vector<1x256xf32>
    %33 = arith.mulf %28, %28 : vector<8x256xf32>
    %cst_15 = arith.constant dense<0.000000e+00> : vector<256xf32>
    %34 = vector.multi_reduction <add>, %33, %cst_15 [0] : vector<8x256xf32> to vector<256xf32>
    %35 = vector.shape_cast %34 : vector<256xf32> to vector<1x256xf32>
    %cst_16 = arith.constant 8.000000e+00 : f32
    %36 = vector.broadcast %cst_16 : f32 to vector<1x256xf32>
    %37 = arith.divf %35, %36 : vector<1x256xf32>
    %38 = arith.mulf %32, %32 : vector<1x256xf32>
    %39 = arith.subf %37, %38 : vector<1x256xf32>
    %cst_17 = arith.constant 0.000000e+00 : f32
    %40 = vector.broadcast %cst_17 : f32 to vector<1x256xf32>
    %41 = arith.maximumf %39, %40 : vector<1x256xf32>
    %42 = vector.broadcast %32 : vector<1x256xf32> to vector<8x256xf32>
    %43 = arith.subf %28, %42 : vector<8x256xf32>
    %cst_18 = arith.constant 9.99999974E-6 : f32
    %44 = vector.broadcast %cst_18 : f32 to vector<1x256xf32>
    %45 = arith.addf %41, %44 : vector<1x256xf32>
    %46 = math.rsqrt %45 : vector<1x256xf32>
    %47 = vector.broadcast %46 : vector<1x256xf32> to vector<8x256xf32>
    %48 = arith.mulf %43, %47 : vector<8x256xf32>
    %cst_19 = arith.constant 0.000000e+00 : f32
    %49 = vector.broadcast %cst_19 : f32 to vector<8x256xf32>
    %50 = arith.maximumf %48, %49 : vector<8x256xf32>
    %51 = arith.truncf %50 : vector<8x256xf32> to vector<8x256xbf16>
    %c0_20 = arith.constant 0 : index
    %c0_21 = arith.constant 0 : index
    %52 = vector.load %arg4[%c0_20, %c0_21] : memref<256x256xbf16, #tpu.memory_space<vmem>>, vector<256x256xbf16>
    %cst_22 = arith.constant dense<0.000000e+00> : vector<8x256xf32>
    %53 = tpu.matmul %51, %52, %cst_22 {dimension_numbers = #tpu.dot_dimension_numbers<[1], [0], [0], [1], [0, 0, 1, 1], [], []>} : vector<8x256xbf16>, vector<256x256xbf16>, vector<8x256xf32> -> vector<8x256xf32>
    %cst_23 = arith.constant dense<0.000000e+00> : vector<256xf32>
    %54 = vector.multi_reduction <add>, %53, %cst_23 [0] : vector<8x256xf32> to vector<256xf32>
    %55 = vector.shape_cast %54 : vector<256xf32> to vector<1x256xf32>
    %cst_24 = arith.constant 8.000000e+00 : f32
    %56 = vector.broadcast %cst_24 : f32 to vector<1x256xf32>
    %57 = arith.divf %55, %56 : vector<1x256xf32>
    %58 = arith.mulf %53, %53 : vector<8x256xf32>
    %cst_25 = arith.constant dense<0.000000e+00> : vector<256xf32>
    %59 = vector.multi_reduction <add>, %58, %cst_25 [0] : vector<8x256xf32> to vector<256xf32>
    %60 = vector.shape_cast %59 : vector<256xf32> to vector<1x256xf32>
    %cst_26 = arith.constant 8.000000e+00 : f32
    %61 = vector.broadcast %cst_26 : f32 to vector<1x256xf32>
    %62 = arith.divf %60, %61 : vector<1x256xf32>
    %63 = arith.mulf %57, %57 : vector<1x256xf32>
    %64 = arith.subf %62, %63 : vector<1x256xf32>
    %cst_27 = arith.constant 0.000000e+00 : f32
    %65 = vector.broadcast %cst_27 : f32 to vector<1x256xf32>
    %66 = arith.maximumf %64, %65 : vector<1x256xf32>
    %67 = vector.broadcast %57 : vector<1x256xf32> to vector<8x256xf32>
    %68 = arith.subf %53, %67 : vector<8x256xf32>
    %cst_28 = arith.constant 9.99999974E-6 : f32
    %69 = vector.broadcast %cst_28 : f32 to vector<1x256xf32>
    %70 = arith.addf %66, %69 : vector<1x256xf32>
    %71 = math.rsqrt %70 : vector<1x256xf32>
    %72 = vector.broadcast %71 : vector<1x256xf32> to vector<8x256xf32>
    %73 = arith.mulf %68, %72 : vector<8x256xf32>
    %c0_29 = arith.constant 0 : index
    %c0_30 = arith.constant 0 : index
    %74 = vector.load %arg1[%c0_29, %c0_30] : memref<8x128xf32, #tpu.memory_space<vmem>>, vector<8x128xf32>
    %75 = arith.truncf %74 : vector<8x128xf32> to vector<8x128xbf16>
    %c0_31 = arith.constant 0 : index
    %c0_32 = arith.constant 0 : index
    %76 = vector.load %arg2[%c0_31, %c0_32] : memref<128x256xbf16, #tpu.memory_space<vmem>>, vector<128x256xbf16>
    %cst_33 = arith.constant dense<0.000000e+00> : vector<8x256xf32>
    %77 = tpu.matmul %75, %76, %cst_33 {dimension_numbers = #tpu.dot_dimension_numbers<[1], [0], [0], [1], [0, 0, 1, 1], [], []>} : vector<8x128xbf16>, vector<128x256xbf16>, vector<8x256xf32> -> vector<8x256xf32>
    %cst_34 = arith.constant dense<0.000000e+00> : vector<256xf32>
    %78 = vector.multi_reduction <add>, %77, %cst_34 [0] : vector<8x256xf32> to vector<256xf32>
    %79 = vector.shape_cast %78 : vector<256xf32> to vector<1x256xf32>
    %cst_35 = arith.constant 8.000000e+00 : f32
    %80 = vector.broadcast %cst_35 : f32 to vector<1x256xf32>
    %81 = arith.divf %79, %80 : vector<1x256xf32>
    %82 = arith.mulf %77, %77 : vector<8x256xf32>
    %cst_36 = arith.constant dense<0.000000e+00> : vector<256xf32>
    %83 = vector.multi_reduction <add>, %82, %cst_36 [0] : vector<8x256xf32> to vector<256xf32>
    %84 = vector.shape_cast %83 : vector<256xf32> to vector<1x256xf32>
    %cst_37 = arith.constant 8.000000e+00 : f32
    %85 = vector.broadcast %cst_37 : f32 to vector<1x256xf32>
    %86 = arith.divf %84, %85 : vector<1x256xf32>
    %87 = arith.mulf %81, %81 : vector<1x256xf32>
    %88 = arith.subf %86, %87 : vector<1x256xf32>
    %cst_38 = arith.constant 0.000000e+00 : f32
    %89 = vector.broadcast %cst_38 : f32 to vector<1x256xf32>
    %90 = arith.maximumf %88, %89 : vector<1x256xf32>
    %91 = vector.broadcast %81 : vector<1x256xf32> to vector<8x256xf32>
    %92 = arith.subf %77, %91 : vector<8x256xf32>
    %cst_39 = arith.constant 9.99999974E-6 : f32
    %93 = vector.broadcast %cst_39 : f32 to vector<1x256xf32>
    %94 = arith.addf %90, %93 : vector<1x256xf32>
    %95 = math.rsqrt %94 : vector<1x256xf32>
    %96 = vector.broadcast %95 : vector<1x256xf32> to vector<8x256xf32>
    %97 = arith.mulf %92, %96 : vector<8x256xf32>
    %cst_40 = arith.constant 0.000000e+00 : f32
    %98 = vector.broadcast %cst_40 : f32 to vector<8x256xf32>
    %99 = arith.maximumf %97, %98 : vector<8x256xf32>
    %100 = arith.truncf %99 : vector<8x256xf32> to vector<8x256xbf16>
    %c0_41 = arith.constant 0 : index
    %c0_42 = arith.constant 0 : index
    %101 = vector.load %arg3[%c0_41, %c0_42] : memref<256x256xbf16, #tpu.memory_space<vmem>>, vector<256x256xbf16>
    %cst_43 = arith.constant dense<0.000000e+00> : vector<8x256xf32>
    %102 = tpu.matmul %100, %101, %cst_43 {dimension_numbers = #tpu.dot_dimension_numbers<[1], [0], [0], [1], [0, 0, 1, 1], [], []>} : vector<8x256xbf16>, vector<256x256xbf16>, vector<8x256xf32> -> vector<8x256xf32>
    %cst_44 = arith.constant dense<0.000000e+00> : vector<256xf32>
    %103 = vector.multi_reduction <add>, %102, %cst_44 [0] : vector<8x256xf32> to vector<256xf32>
    %104 = vector.shape_cast %103 : vector<256xf32> to vector<1x256xf32>
    %cst_45 = arith.constant 8.000000e+00 : f32
    %105 = vector.broadcast %cst_45 : f32 to vector<1x256xf32>
    %106 = arith.divf %104, %105 : vector<1x256xf32>
    %107 = arith.mulf %102, %102 : vector<8x256xf32>
    %cst_46 = arith.constant dense<0.000000e+00> : vector<256xf32>
    %108 = vector.multi_reduction <add>, %107, %cst_46 [0] : vector<8x256xf32> to vector<256xf32>
    %109 = vector.shape_cast %108 : vector<256xf32> to vector<1x256xf32>
    %cst_47 = arith.constant 8.000000e+00 : f32
    %110 = vector.broadcast %cst_47 : f32 to vector<1x256xf32>
    %111 = arith.divf %109, %110 : vector<1x256xf32>
    %112 = arith.mulf %106, %106 : vector<1x256xf32>
    %113 = arith.subf %111, %112 : vector<1x256xf32>
    %cst_48 = arith.constant 0.000000e+00 : f32
    %114 = vector.broadcast %cst_48 : f32 to vector<1x256xf32>
    %115 = arith.maximumf %113, %114 : vector<1x256xf32>
    %116 = vector.broadcast %106 : vector<1x256xf32> to vector<8x256xf32>
    %117 = arith.subf %102, %116 : vector<8x256xf32>
    %cst_49 = arith.constant 9.99999974E-6 : f32
    %118 = vector.broadcast %cst_49 : f32 to vector<1x256xf32>
    %119 = arith.addf %115, %118 : vector<1x256xf32>
    %120 = math.rsqrt %119 : vector<1x256xf32>
    %121 = vector.broadcast %120 : vector<1x256xf32> to vector<8x256xf32>
    %122 = arith.mulf %117, %121 : vector<8x256xf32>
    %cst_50 = arith.constant 0.000000e+00 : f32
    %123 = vector.broadcast %cst_50 : f32 to vector<8x256xf32>
    %124 = arith.maximumf %122, %123 : vector<8x256xf32>
    %125 = arith.truncf %124 : vector<8x256xf32> to vector<8x256xbf16>
    %c0_51 = arith.constant 0 : index
    %c0_52 = arith.constant 0 : index
    %126 = vector.load %arg4[%c0_51, %c0_52] : memref<256x256xbf16, #tpu.memory_space<vmem>>, vector<256x256xbf16>
    %cst_53 = arith.constant dense<0.000000e+00> : vector<8x256xf32>
    %127 = tpu.matmul %125, %126, %cst_53 {dimension_numbers = #tpu.dot_dimension_numbers<[1], [0], [0], [1], [0, 0, 1, 1], [], []>} : vector<8x256xbf16>, vector<256x256xbf16>, vector<8x256xf32> -> vector<8x256xf32>
    %cst_54 = arith.constant dense<0.000000e+00> : vector<256xf32>
    %128 = vector.multi_reduction <add>, %127, %cst_54 [0] : vector<8x256xf32> to vector<256xf32>
    %129 = vector.shape_cast %128 : vector<256xf32> to vector<1x256xf32>
    %cst_55 = arith.constant 8.000000e+00 : f32
    %130 = vector.broadcast %cst_55 : f32 to vector<1x256xf32>
    %131 = arith.divf %129, %130 : vector<1x256xf32>
    %132 = arith.mulf %127, %127 : vector<8x256xf32>
    %cst_56 = arith.constant dense<0.000000e+00> : vector<256xf32>
    %133 = vector.multi_reduction <add>, %132, %cst_56 [0] : vector<8x256xf32> to vector<256xf32>
    %134 = vector.shape_cast %133 : vector<256xf32> to vector<1x256xf32>
    %cst_57 = arith.constant 8.000000e+00 : f32
    %135 = vector.broadcast %cst_57 : f32 to vector<1x256xf32>
    %136 = arith.divf %134, %135 : vector<1x256xf32>
    %137 = arith.mulf %131, %131 : vector<1x256xf32>
    %138 = arith.subf %136, %137 : vector<1x256xf32>
    %cst_58 = arith.constant 0.000000e+00 : f32
    %139 = vector.broadcast %cst_58 : f32 to vector<1x256xf32>
    %140 = arith.maximumf %138, %139 : vector<1x256xf32>
    %141 = vector.broadcast %131 : vector<1x256xf32> to vector<8x256xf32>
    %142 = arith.subf %127, %141 : vector<8x256xf32>
    %cst_59 = arith.constant 9.99999974E-6 : f32
    %143 = vector.broadcast %cst_59 : f32 to vector<1x256xf32>
    %144 = arith.addf %140, %143 : vector<1x256xf32>
    %145 = math.rsqrt %144 : vector<1x256xf32>
    %146 = vector.broadcast %145 : vector<1x256xf32> to vector<8x256xf32>
    %147 = arith.mulf %142, %146 : vector<8x256xf32>
    %148 = arith.truncf %73 : vector<8x256xf32> to vector<8x256xbf16>
    %149 = arith.truncf %147 : vector<8x256xf32> to vector<8x256xbf16>
    %cst_60 = arith.constant dense<0.000000e+00> : vector<256x256xf32>
    %150 = tpu.matmul %148, %149, %cst_60 {dimension_numbers = #tpu.dot_dimension_numbers<[0], [0], [1], [1], [0, 1, 1, 1], [], []>} : vector<8x256xbf16>, vector<8x256xbf16>, vector<256x256xf32> -> vector<256x256xf32>
    %cst_61 = arith.constant 1.250000e-01 : f32
    %151 = vector.broadcast %cst_61 : f32 to vector<256x256xf32>
    %152 = arith.mulf %150, %151 : vector<256x256xf32>
    %153 = tpu.iota {dimensions = array<i32: 0>} : vector<256x256xi32>
    %154 = tpu.iota {dimensions = array<i32: 1>} : vector<256x256xi32>
    %155 = arith.cmpi eq, %153, %154 : vector<256x256xi32>
    %cst_62 = arith.constant 1.000000e+00 : f32
    %156 = vector.broadcast %cst_62 : f32 to vector<256x256xf32>
    %157 = arith.subf %152, %156 : vector<256x256xf32>
    %158 = arith.mulf %157, %157 : vector<256x256xf32>
    %159 = arith.mulf %152, %152 : vector<256x256xf32>
    %cst_63 = arith.constant 5.000000e-03 : f32
    %160 = vector.broadcast %cst_63 : f32 to vector<256x256xf32>
    %161 = arith.mulf %160, %159 : vector<256x256xf32>
    %162 = arith.select %155, %158, %161 : vector<256x256xi1>, vector<256x256xf32>
    %163 = vector.shape_cast %162 : vector<256x256xf32> to vector<1x256x256xf32>
    %cst_64 = arith.constant dense<0.000000e+00> : vector<1xf32>
    %164 = vector.multi_reduction <add>, %163, %cst_64 [1, 2] : vector<1x256x256xf32> to vector<1xf32>
    %165 = vector.shape_cast %164 : vector<1xf32> to vector<1x1x1xf32>
    %166 = vector.extract %165[0, 0, 0] : f32 from vector<1x1x1xf32>
    %167 = vector.broadcast %166 : f32 to vector<1x1xf32>
    %c0_65 = arith.constant 0 : index
    %c0_66 = arith.constant 0 : index
    %168 = vector.load %arg5[%c0_65, %c0_66] : memref<1x1xf32, #tpu.memory_space<vmem>>, vector<1x1xf32>
    tpu.vector_store %arg5[%c0_65, %c0_66], %167 {strides = array<i32>} : memref<1x1xf32, #tpu.memory_space<vmem>>, vector<1x1xf32>,
    return
  }
}

</mosaic_0001>

<bundles_post_ra>
// kernel: tpu_custom_call.1
= control target key start
LH: loop header
LB: loop body
LE: loop exit
PB: predicated region body
PF: predicated region fallthrough
CT: control target
= control target key end

     0   :  { %10 = vsyncpa [#allocation3], 0  ;;  %s2772_s0 = inlined_call_operand.hbm [shape: f32[8,128], index: 0, kind: input, shape index: {}]   ;;  %s2773_s1 = inlined_call_operand.hbm [shape: f32[8,128], index: 1, kind: input, shape index: {}]   ;;  %s2774_s2 = inlined_call_operand.hbm [shape: bf16[128,256], index: 2, kind: input, shape index: {}]   ;;  %s2775_s3 = inlined_call_operand.hbm [shape: bf16[256,256], index: 3, kind: input, shape index: {}]   ;;  %s2776_s4 = inlined_call_operand.hbm [shape: bf16[256,256], index: 4, kind: input, shape index: {}]   ;;  %s2777_s5 = inlined_call_operand.hbm [shape: f32[1,1], index: 5, kind: output, shape index: {}]  }
   0x1   :  { %11 = vsyncpa [#allocation6], 0 }
   0x2   :  { %12 = vsyncpa [#allocation9], 0 }
   0x3   :  { %13 = vsyncpa [#allocation4], 0  ;;  %s2402_s18 = smov [#allocation5]  }
   0x4   :  { %s30_s19 = sshll.u32 %s2402_s18, 4  ;;  %s31_s19 = int_to_ptr.vmem [resolvable:$true] %s30_s19 }
   0x5   :  { %s2282_s20 = scalar_lea.vmem %s31_s19, 128  ;;  %p2287_p1 = scmp.lt.s32.totalorder %s31_s19, %s31_s19 }
   0x6   :  { %p2283_p0 = scmp.ne.s32.totalorder %s31_s19, %s2282_s20  ;;  %p2288_p2 = scmp.lt.s32.totalorder %s2282_s20, %s2282_s20 }
   0x8   :  { %p2289_p3 = por %p2288_p2, %p2287_p1 }
   0xa   :  { %p2290_p4 = pnand %p2289_p3, %p2283_p0 }
   0xc   :  { %2293 = shalt.err (!%p2290_p4)
}
   0xd   :  { %33 = dma.hbm_to_vmem [thread:$0]  %s2773_s1, 128, %s31_s19, [#allocation6]  }
   0xe   :  { %s2403_s23 = smov [#allocation8]   ;;  %s2404_s25 = smov [#allocation2]  }
   0xf   :  { %s51_s24 = sshll.u32 %s2403_s23, 4  ;;  %s20_s26 = sshll.u32 %s2404_s25, 4  ;;  %s52_s24 = int_to_ptr.vmem [resolvable:$true] %s51_s24  ;;  %s21_s26 = int_to_ptr.vmem [resolvable:$true] %s20_s26 }
  0x10   :  { %s2302_s27 = scalar_lea.vmem %s52_s24, 4096  ;;  %p2307_p6 = scmp.lt.s32.totalorder %s52_s24, %s52_s24 }
  0x11   :  { %p2303_p5 = scmp.ne.s32.totalorder %s52_s24, %s2302_s27  ;;  %p2308_p7 = scmp.lt.s32.totalorder %s2302_s27, %s2302_s27 }
  0x13   :  { %p2309_p8 = por %p2308_p7, %p2307_p6 }
  0x15   :  { %p2310_p9 = pnand %p2309_p8, %p2303_p5 }
  0x17   :  { %2313 = shalt.err (!%p2310_p9)
}
  0x18   :  { %s2405_s28 = smov 128   ;;  %s2406_s29 = smov 8  }
  0x19   :  { %57 = dma.hbm_to_vmem [thread:$0]  %s2775_s3, 4096, %s52_s24, [#allocation9], %s2405_s28, %s2405_s28, %s2406_s29  }
  0x1a   :  { %s2322_s1 = scalar_lea.vmem %s21_s26, 128  ;;  %p2327_p11 = scmp.lt.s32.totalorder %s21_s26, %s21_s26 }
  0x1b   :  { %p2323_p10 = scmp.ne.s32.totalorder %s21_s26, %s2322_s1  ;;  %p2328_p12 = scmp.lt.s32.totalorder %s2322_s1, %s2322_s1 }
  0x1d   :  { %p2329_p13 = por %p2328_p12, %p2327_p11 }
  0x1f   :  { %p2330_p0 = pnand %p2329_p13, %p2323_p10 }
  0x21   :  { %2333 = shalt.err (!%p2330_p0)
}
  0x22   :  { %23 = dma.hbm_to_vmem [thread:$0]  %s2772_s0, 128, %s21_s26, [#allocation3]  }
  0x23   :  { %s2407_s9 = smov [#allocation7]   ;;  %s2408_s11 = smov [#allocation10]  }
  0x24   :  { %s39_s10 = sshll.u32 %s2407_s9, 4  ;;  %s63_s12 = sshll.u32 %s2408_s11, 4  ;;  %s40_s10 = int_to_ptr.vmem [resolvable:$true] %s39_s10  ;;  %s64_s12 = int_to_ptr.vmem [resolvable:$true] %s63_s12 }
  0x25   :  { %s2342_s13 = scalar_lea.vmem %s40_s10, 2048  ;;  %p2347_p2 = scmp.lt.s32.totalorder %s40_s10, %s40_s10 }
  0x26   :  { %p2343_p1 = scmp.ne.s32.totalorder %s40_s10, %s2342_s13  ;;  %p2348_p3 = scmp.lt.s32.totalorder %s2342_s13, %s2342_s13 }
  0x28   :  { %p2349_p4 = por %p2348_p3, %p2347_p2 }
  0x2a   :  { %p2350_p5 = pnand %p2349_p4, %p2343_p1 }
  0x2c   :  { %2353 = shalt.err (!%p2350_p5)
}
  0x2d   :  { %45 = dma.hbm_to_vmem [thread:$0]  %s2774_s2, 2048, %s40_s10, [#allocation6], %s2405_s28, %s2405_s28, %s2406_s29  }
  0x2e   :  { %s2362_s0 = scalar_lea.vmem %s64_s12, 4096  ;;  %p2367_p7 = scmp.lt.s32.totalorder %s64_s12, %s64_s12 }
  0x2f   :  { %p2363_p6 = scmp.ne.s32.totalorder %s64_s12, %s2362_s0  ;;  %p2368_p8 = scmp.lt.s32.totalorder %s2362_s0, %s2362_s0 }
  0x31   :  { %p2369_p9 = por %p2368_p8, %p2367_p7 }
  0x33   :  { %p2370_p10 = pnand %p2369_p9, %p2363_p6 }
  0x35   :  { %2373 = shalt.err (!%p2370_p10)
}
  0x36   :  { %69 = dma.hbm_to_vmem [thread:$0]  %s2776_s4, 4096, %s64_s12, [#allocation9], %s2405_s28, %s2405_s28, %s2406_s29  }
  0x37   :  { %2394 = dma.done.wait [#allocation3], 128  }
  0x38   :  { %2395 = vsyncadd [#allocation3], 4294967168 }
  0x39   :  { %2396 = dma.done.wait [#allocation6], 2176  }
  0x3a   :  { %2397 = vsyncadd [#allocation6], 4294965120 }
  0x3b   :  { %2398 = dma.done.wait [#allocation9], 8192  }
  0x3c   :  { %2399 = vsyncadd [#allocation9], 4294959104  ;;  %v2778_v0 = vmov 0   ;;  %v2466_v1 = vld [vmem:[#allocation7 + $0x74] ss:$8 sps:$4 sm:$0xff]   ;;  %vm1182_vm0 = vcmask 1043456  }
  0x3d   :  { %216 = vmatprep.mubr.bf16.mxu0 %v2778_v0  ;;  %v2468_v2 = vld [vmem:[#allocation7 + $0x70] ss:$8 sps:$4 sm:$0xff]   ;;  %184 = vmatprep.subr.bf16.mxu0 %v2466_v1  ;;  %v2471_v3 = vld [vmem:[#allocation7 + $0x64] ss:$8 sps:$4 sm:$0xff]   ;;  %v2474_v4 = vld [vmem:[#allocation7 + $0x60] ss:$8 sps:$4 sm:$0xff]  }
  0x3e   :  { %185 = vmatpush1.bf16.msra.mxu0 %v2468_v2  ;;  %v2477_v5 = vld [vmem:[#allocation7 + $0x54] ss:$8 sps:$4 sm:$0xff]   ;;  %v2480_v6 = vld [vmem:[#allocation7 + $0x50] ss:$8 sps:$4 sm:$0xff]   ;;  %v2483_v7 = vld [vmem:[#allocation7 + $0x44] ss:$8 sps:$4 sm:$0xff]  }
  0x3f   :  { %186 = vmatprep.subr.bf16.mxu0 %v2471_v3  ;;  %v2485_v8 = vld [vmem:[#allocation7 + $0x40] ss:$8 sps:$4 sm:$0xff]   ;;  %v2487_v9 = vld [vmem:[#allocation7 + $0x34] ss:$8 sps:$4 sm:$0xff]   ;;  %v2156_v11 = vld [vmem:[#allocation8 + $0x70] ss:$8 sps:$4 sm:$0xff]  }
  0x40   :  { %v2154_v10 = vld [vmem:[#allocation8 + $0x74] ss:$8 sps:$4 sm:$0xff]   ;;  %v2157_v12 = vld [vmem:[#allocation8 + $0x64] ss:$8 sps:$4 sm:$0xff]   ;;  %v2491_v13 = vld [vmem:[#allocation7 + $0x30] ss:$8 sps:$4 sm:$0xff]  }
  0x41   :  { %466 = vmatprep.subr.bf16.mxu1 %v2154_v10  ;;  %v2159_v14 = vld [vmem:[#allocation8 + $0x60] ss:$8 sps:$4 sm:$0xff]   ;;  %v2160_v15 = vld [vmem:[#allocation8 + $0x54] ss:$8 sps:$4 sm:$0xff]   ;;  %v2495_v16 = vld [vmem:[#allocation7 + $0x24] ss:$8 sps:$4 sm:$0xff]  }
  0x42   :  { %187 = vmatpush1.bf16.msra.mxu0 %v2474_v4  ;;  %467 = vmatpush1.bf16.msra.mxu1 %v2156_v11  ;;  %v2497_v17 = vld [vmem:[#allocation7 + $0x20] ss:$8 sps:$4 sm:$0xff]   ;;  %v2162_v18 = vld [vmem:[#allocation8 + $0x50] ss:$8 sps:$4 sm:$0xff]   ;;  %v2163_v19 = vld [vmem:[#allocation8 + $0x44] ss:$8 sps:$4 sm:$0xff]  }
  0x43   :  { %188 = vmatprep.subr.bf16.mxu0 %v2477_v5  ;;  %468 = vmatprep.subr.bf16.mxu1 %v2157_v12  ;;  %v2499_v20 = vld [vmem:[#allocation7 + $0x14] ss:$8 sps:$4 sm:$0xff]   ;;  %v2165_v21 = vld [vmem:[#allocation8 + $0x40] ss:$8 sps:$4 sm:$0xff]   ;;  %v2503_v22 = vld [vmem:[#allocation7 + $0x10] ss:$8 sps:$4 sm:$0xff]  }
  0x44   :  { %v2166_v23 = vld [vmem:[#allocation8 + $0x34] ss:$8 sps:$4 sm:$0xff]   ;;  %v2505_v24 = vld [vmem:[#allocation7 + $0x4] ss:$8 sps:$4 sm:$0xff]   ;;  %v2168_v25 = vld [vmem:[#allocation8 + $0x30] ss:$8 sps:$4 sm:$0xff]  }
  0x45   :  { %v2509_v26 = vld [vmem:[#allocation7] ss:$8 sps:$4 sm:$0xff]   ;;  %v86_v27 = vld [vmem:[#allocation2] sm:$0xff]  ;;  %v2169_v29 = vld [vmem:[#allocation8 + $0x24] ss:$8 sps:$4 sm:$0xff]   ;;  %vm1133_vm1 = vcmask 64512  }
  0x46   :  { %189 = vmatpush1.bf16.msra.mxu0 %v2480_v6  ;;  %469 = vmatpush1.bf16.msra.mxu1 %v2159_v14  ;;  %v87_v28 = vpack.c.bf16 %v86_v27, %v86_v27  ;;  %v2171_v30 = vld [vmem:[#allocation8 + $0x20] ss:$8 sps:$4 sm:$0xff]   ;;  %v2172_v31 = vld [vmem:[#allocation8 + $0x14] ss:$8 sps:$4 sm:$0xff]   ;;  %v2174_v32 = vld [vmem:[#allocation8 + $0x10] ss:$8 sps:$4 sm:$0xff]  }
  0x47   :  { %190 = vmatprep.subr.bf16.mxu0 %v2483_v7  ;;  %470 = vmatprep.subr.bf16.mxu1 %v2160_v15  ;;  %v2175_v33 = vld [vmem:[#allocation8 + $0x4] ss:$8 sps:$4 sm:$0xff]   ;;  %v2177_v34 = vld [vmem:[#allocation8] ss:$8 sps:$4 sm:$0xff]   ;;  %v2178_v35 = vld [vmem:[#allocation8 + $0xf4] ss:$8 sps:$4 sm:$0xff]  }
  0x48   :  { %v2180_v36 = vld [vmem:[#allocation8 + $0xf0] ss:$8 sps:$4 sm:$0xff]   ;;  %v2181_v37 = vld [vmem:[#allocation8 + $0xe4] ss:$8 sps:$4 sm:$0xff]   ;;  %v2183_v38 = vld [vmem:[#allocation8 + $0xe0] ss:$8 sps:$4 sm:$0xff]  }
  0x49   :  { %v2184_v39 = vld [vmem:[#allocation8 + $0xd4] ss:$8 sps:$4 sm:$0xff]   ;;  %v2186_v40 = vld [vmem:[#allocation8 + $0xd0] ss:$8 sps:$4 sm:$0xff]   ;;  %v2187_v41 = vld [vmem:[#allocation8 + $0xc4] ss:$8 sps:$4 sm:$0xff]  }
  0x4a   :  { %191 = vmatpush1.bf16.msra.mxu0 %v2485_v8  ;;  %471 = vmatpush1.bf16.msra.mxu1 %v2162_v18  ;;  %v2189_v42 = vld [vmem:[#allocation8 + $0xc0] ss:$8 sps:$4 sm:$0xff]   ;;  %v2190_v43 = vld [vmem:[#allocation8 + $0xb4] ss:$8 sps:$4 sm:$0xff]   ;;  %v2192_v44 = vld [vmem:[#allocation8 + $0xb0] ss:$8 sps:$4 sm:$0xff]  }
  0x4b   :  { %192 = vmatprep.subr.bf16.mxu0 %v2487_v9  ;;  %472 = vmatprep.subr.bf16.mxu1 %v2163_v19  ;;  %v2193_v45 = vld [vmem:[#allocation8 + $0xa4] ss:$8 sps:$4 sm:$0xff]   ;;  %v2195_v46 = vld [vmem:[#allocation8 + $0xa0] ss:$8 sps:$4 sm:$0xff]   ;;  %v2196_v47 = vld [vmem:[#allocation8 + $0x94] ss:$8 sps:$4 sm:$0xff]  }
  0x4c   :  { %v2198_v48 = vld [vmem:[#allocation8 + $0x90] ss:$8 sps:$4 sm:$0xff]   ;;  %v2199_v49 = vld [vmem:[#allocation8 + $0x84] ss:$8 sps:$4 sm:$0xff]   ;;  %v2201_v50 = vld [vmem:[#allocation8 + $0x80] ss:$8 sps:$4 sm:$0xff]  }
  0x4d   :  { %v2514_v51 = vld [vmem:[#allocation10 + $0x74] ss:$8 sps:$4 sm:$0xff]   ;;  %s2410_s2 = smov [#allocation11]  }
  0x4e   :  { %193 = vmatpush1.bf16.msra.mxu0 %v2491_v13  ;;  %473 = vmatpush1.bf16.msra.mxu1 %v2165_v21  ;;  %s1947_s4 = sshll.u32 %s2410_s2, 4  ;;  %s1948_s4 = int_to_ptr.vmem [resolvable:$true] %s1947_s4 }
  0x4f   :  { %194 = vmatprep.subr.bf16.mxu0 %v2495_v16  ;;  %474 = vmatprep.subr.bf16.mxu1 %v2166_v23  ;;  %s2374_s18 = scalar_lea.vmem %s1948_s4, 16  ;;  %s2378_s19 = scalar_lea.vmem %s1948_s4, 32 }
  0x50   :  { %p2375_p11 = scmp.ne.s32.totalorder %s1948_s4, %s2374_s18  ;;  %p2379_p12 = scmp.lt.s32.totalorder %s1948_s4, %s1948_s4 }
  0x51   :  { %p2380_p13 = scmp.lt.s32.totalorder %s2378_s19, %s2374_s18 }
  0x52   :  { %195 = vmatpush1.bf16.msra.mxu0 %v2497_v17  ;;  %475 = vmatpush1.bf16.msra.mxu1 %v2168_v25 }
  0x53   :  { %196 = vmatprep.subr.bf16.mxu0 %v2499_v20  ;;  %476 = vmatprep.subr.bf16.mxu1 %v2169_v29  ;;  %p2381_p0 = por %p2380_p13, %p2379_p12 }
  0x55   :  { %p2382_p1 = pnand %p2381_p0, %p2375_p11 }
  0x56   :  { %197 = vmatpush1.bf16.msra.mxu0 %v2503_v22  ;;  %477 = vmatpush1.bf16.msra.mxu1 %v2171_v30 }
  0x57   :  { %198 = vmatprep.subr.bf16.mxu0 %v2505_v24  ;;  %478 = vmatprep.subr.bf16.mxu1 %v2172_v31 }
  0x5a   :  { %199 = vmatpush1.bf16.msra.mxu0 %v2509_v26  ;;  %479 = vmatpush1.bf16.msra.mxu1 %v2174_v32 }
  0x5b   :  { %923 = vmatprep.subr.bf16.mxu0 %v2154_v10  ;;  %480 = vmatprep.subr.bf16.mxu1 %v2175_v33 }
  0x5d   :  { %217 = vmatmul.mubr.bf16.vlgmr.msra.gmra.mxu0 %v87_v28 }
  0x5e   :  { %924 = vmatpush1.bf16.msra.mxu0 %v2156_v11  ;;  %481 = vmatpush1.bf16.msra.mxu1 %v2177_v34 }
  0x5f   :  { %925 = vmatprep.subr.bf16.mxu0 %v2157_v12  ;;  %482 = vmatprep.subr.bf16.mxu1 %v2178_v35 }
  0x62   :  { %926 = vmatpush1.bf16.msra.mxu0 %v2159_v14  ;;  %483 = vmatpush2.bf16.msra.mxu1 %v2180_v36 }
  0x63   :  { %927 = vmatprep.subr.bf16.mxu0 %v2160_v15  ;;  %484 = vmatprep.subr.bf16.mxu1 %v2181_v37 }
  0x66   :  { %928 = vmatpush1.bf16.msra.mxu0 %v2162_v18  ;;  %485 = vmatpush2.bf16.msra.mxu1 %v2183_v38 }
  0x67   :  { %929 = vmatprep.subr.bf16.mxu0 %v2163_v19  ;;  %486 = vmatprep.subr.bf16.mxu1 %v2184_v39 }
  0x6a   :  { %930 = vmatpush1.bf16.msra.mxu0 %v2165_v21  ;;  %487 = vmatpush2.bf16.msra.mxu1 %v2186_v40 }
  0x6b   :  { %931 = vmatprep.subr.bf16.mxu0 %v2166_v23  ;;  %488 = vmatprep.subr.bf16.mxu1 %v2187_v41 }
  0x6e   :  { %932 = vmatpush1.bf16.msra.mxu0 %v2168_v25  ;;  %489 = vmatpush2.bf16.msra.mxu1 %v2189_v42 }
  0x6f   :  { %933 = vmatprep.subr.bf16.mxu0 %v2169_v29  ;;  %490 = vmatprep.subr.bf16.mxu1 %v2190_v43 }
  0x72   :  { %934 = vmatpush1.bf16.msra.mxu0 %v2171_v30  ;;  %491 = vmatpush2.bf16.msra.mxu1 %v2192_v44 }
  0x73   :  { %935 = vmatprep.subr.bf16.mxu0 %v2172_v31  ;;  %492 = vmatprep.subr.bf16.mxu1 %v2193_v45 }
  0x76   :  { %936 = vmatpush1.bf16.msra.mxu0 %v2174_v32  ;;  %493 = vmatpush2.bf16.msra.mxu1 %v2195_v46 }
  0x77   :  { %937 = vmatprep.subr.bf16.mxu0 %v2175_v33  ;;  %494 = vmatprep.subr.bf16.mxu1 %v2196_v47 }
  0x7a   :  { %938 = vmatpush1.bf16.msra.mxu0 %v2177_v34  ;;  %495 = vmatpush2.bf16.msra.mxu1 %v2198_v48 }
  0x7b   :  { %939 = vmatprep.subr.bf16.mxu0 %v2178_v35  ;;  %496 = vmatprep.subr.bf16.mxu1 %v2199_v49 }
  0x7e   :  { %940 = vmatpush2.bf16.msra.mxu0 %v2180_v36  ;;  %497 = vmatpush2.bf16.msra.mxu1 %v2201_v50 }
  0x7f   :  { %941 = vmatprep.subr.bf16.mxu0 %v2181_v37  ;;  %747 = vmatprep.subr.bf16.mxu1 %v2514_v51 }
  0x82   :  { %942 = vmatpush2.bf16.msra.mxu0 %v2183_v38 }
  0x83   :  { %943 = vmatprep.subr.bf16.mxu0 %v2184_v39 }
  0x86   :  { %944 = vmatpush2.bf16.msra.mxu0 %v2186_v40 }
  0x87   :  { %945 = vmatprep.subr.bf16.mxu0 %v2187_v41 }
  0x8a   :  { %946 = vmatpush2.bf16.msra.mxu0 %v2189_v42 }
  0x8b   :  { %947 = vmatprep.subr.bf16.mxu0 %v2190_v43 }
  0x8e   :  { %948 = vmatpush2.bf16.msra.mxu0 %v2192_v44 }
  0x8f   :  { %949 = vmatprep.subr.bf16.mxu0 %v2193_v45 }
  0x92   :  { %950 = vmatpush2.bf16.msra.mxu0 %v2195_v46 }
  0x93   :  { %951 = vmatprep.subr.bf16.mxu0 %v2196_v47 }
  0x96   :  { %952 = vmatpush2.bf16.msra.mxu0 %v2198_v48 }
  0x97   :  { %953 = vmatprep.subr.bf16.mxu0 %v2199_v49 }
  0x9a   :  { %954 = vmatpush2.bf16.msra.mxu0 %v2201_v50 }
 0x11d   :  { %v218_v52 = vpop.f32.mrf.mxu0 }
 0x11e   :  { %v225_v53 = vrot.slane %v218_v52, 4  ;;  %v240_v54 = vmul.f32 %v218_v52, %v218_v52 }
 0x11f   :  { %v220_v55 = vpop.f32.mrf.mxu0 }
 0x120   :  { %v226_v56 = vadd.f32 %v225_v53, %v218_v52  ;;  %v242_v57 = vrot.slane %v240_v54, 4  ;;  %v231_v58 = vrot.slane %v220_v55, 4  ;;  %v241_v59 = vmul.f32 %v220_v55, %v220_v55 }
 0x121   :  { %v222_v60 = vpop.f32.mrf.mxu0 }
 0x122   :  { %v227_v61 = vrot.slane %v226_v56, 2  ;;  %v243_v62 = vadd.f32 %v242_v57, %v240_v54  ;;  %v232_v63 = vadd.f32 %v231_v58, %v220_v55  ;;  %v248_v10 = vrot.slane %v241_v59, 4 }
 0x123   :  { %v223_v11 = vpop.f32.mrf.mxu0 }
 0x124   :  { %v228_v12 = vadd.f32 %v227_v61, %v226_v56  ;;  %v244_v14 = vrot.slane %v243_v62, 2  ;;  %v233_v15 = vrot.slane %v232_v63, 2  ;;  %v249_v18 = vadd.f32 %v248_v10, %v241_v59  ;;  %v2517_v59 = vld [vmem:[#allocation10 + $0x70] ss:$8 sps:$4 sm:$0xff]   ;;  %v2519_v61 = vld [vmem:[#allocation10 + $0x64] ss:$8 sps:$4 sm:$0xff]  }
 0x125   :  { %v2534_v10 = vld [vmem:[#allocation10 + $0x40] ss:$8 sps:$4 sm:$0xff]   ;;  %v2537_v11 = vld [vmem:[#allocation10 + $0x34] ss:$8 sps:$4 sm:$0xff]  }
 0x126   :  { %v229_v19 = vrot.slane %v228_v12, 1  ;;  %v245_v21 = vadd.f32 %v244_v14, %v243_v62  ;;  %v250_v23 = vrot.slane %v249_v18, 2  ;;  %v234_v25 = vadd.f32 %v233_v15, %v232_v63  ;;  %v2522_v62 = vld [vmem:[#allocation10 + $0x60] ss:$8 sps:$4 sm:$0xff]   ;;  %v2531_v63 = vld [vmem:[#allocation10 + $0x44] ss:$8 sps:$4 sm:$0xff]  }
 0x127   :  { %v2544_v14 = vld [vmem:[#allocation10 + $0x24] ss:$8 sps:$4 sm:$0xff]   ;;  %v2546_v15 = vld [vmem:[#allocation10 + $0x20] ss:$8 sps:$4 sm:$0xff]  }
 0x128   :  { %v230_v27 = vadd.f32 %v229_v19, %v228_v12  ;;  %v246_v28 = vrot.slane %v245_v21, 1  ;;  %v251_v29 = vadd.f32 %v250_v23, %v249_v18  ;;  %v235_v30 = vrot.slane %v234_v25, 1  ;;  %v2540_v12 = vld [vmem:[#allocation10 + $0x30] ss:$8 sps:$4 sm:$0xff]   ;;  %v2550_v18 = vld [vmem:[#allocation10 + $0x14] ss:$8 sps:$4 sm:$0xff]  }
 0x129   :  { %v2552_v19 = vld [vmem:[#allocation10 + $0x10] ss:$8 sps:$4 sm:$0xff]   ;;  %v2558_v23 = vld [vmem:[#allocation10] ss:$8 sps:$4 sm:$0xff]  }
 0x12a   :  { %v238_v31 = vmul.f32 0.125, %v230_v27  ;;  %v247_v32 = vadd.f32 %v246_v28, %v245_v21  ;;  %v252_v33 = vrot.slane %v251_v29, 1  ;;  %v236_v34 = vadd.f32 %v235_v30, %v234_v25  ;;  %v2556_v21 = vld [vmem:[#allocation10 + $0x4] ss:$8 sps:$4 sm:$0xff]   ;;  %v2562_v25 = vld [vmem:[#allocation10 + $0xf4] ss:$8 sps:$4 sm:$0xff]  }
 0x12b   :  { %v2564_v27 = vld [vmem:[#allocation10 + $0xf0] ss:$8 sps:$4 sm:$0xff]   ;;  %v2568_v28 = vld [vmem:[#allocation10 + $0xe4] ss:$8 sps:$4 sm:$0xff]   ;;  %v2574_v30 = vld [vmem:[#allocation10 + $0xd4] ss:$8 sps:$4 sm:$0xff]  }
 0x12c   :  { %v254_v35 = vmul.f32 0.125, %v247_v32  ;;  %v256_v36 = vmul.f32 %v238_v31, %v238_v31  ;;  %v239_v37 = vmul.f32 0.125, %v236_v34  ;;  %v253_v38 = vadd.f32 %v252_v33, %v251_v29  ;;  %v2570_v29 = vld [vmem:[#allocation10 + $0xe0] ss:$8 sps:$4 sm:$0xff]   ;;  %2792 = vst [vmem:[#allocation16_spill] sm:$0xff] %v2574_v30 }
 0x12d   :  { %v262_v47 = vsub.f32 %v218_v52, %v238_v31  ;;  %v2525_v52 = vld [vmem:[#allocation10 + $0x54] ss:$8 sps:$4 sm:$0xff]   ;;  %v2576_v31 = vld [vmem:[#allocation10 + $0xd0] ss:$8 sps:$4 sm:$0xff]   ;;  %v2580_v32 = vld [vmem:[#allocation10 + $0xc4] ss:$8 sps:$4 sm:$0xff]  }
 0x12e   :  { %v258_v39 = vsub.f32 %v254_v35, %v256_v36  ;;  %v257_v40 = vmul.f32 %v239_v37, %v239_v37  ;;  %v255_v41 = vmul.f32 0.125, %v253_v38  ;;  %v263_v50 = vsub.f32 %v220_v55, %v239_v37  ;;  %v2528_v55 = vld [vmem:[#allocation10 + $0x50] ss:$8 sps:$4 sm:$0xff]   ;;  %2793 = vst [vmem:[#allocation17_spill] sm:$0xff] %v2576_v31  ;;  %2794 = vst [vmem:[#allocation18_spill] sm:$0xff] %v2580_v32 }
 0x12f   :  { %v2582_v33 = vld [vmem:[#allocation10 + $0xc0] ss:$8 sps:$4 sm:$0xff]   ;;  %v2586_v34 = vld [vmem:[#allocation10 + $0xb4] ss:$8 sps:$4 sm:$0xff]   ;;  %v2588_v35 = vld [vmem:[#allocation10 + $0xb0] ss:$8 sps:$4 sm:$0xff]  }
 0x130   :  { %v260_v42 = vmax.f32 %v258_v39, 0.0  ;;  %v259_v43 = vsub.f32 %v255_v41, %v257_v40  ;;  %2795 = vst [vmem:[#allocation19_spill] sm:$0xff] %v2582_v33  ;;  %2796 = vst [vmem:[#allocation20_spill] sm:$0xff] %v2586_v34  ;;  %v2592_v36 = vld [vmem:[#allocation10 + $0xa4] ss:$8 sps:$4 sm:$0xff]  }
 0x131   :  { %2797 = vst [vmem:[#allocation21_spill] sm:$0xff] %v2588_v35  ;;  %2798 = vst [vmem:[#allocation22_spill] sm:$0xff] %v2592_v36  ;;  %v2594_v37 = vld [vmem:[#allocation10 + $0xa0] ss:$8 sps:$4 sm:$0xff]   ;;  %v2598_v38 = vld [vmem:[#allocation10 + $0x94] ss:$8 sps:$4 sm:$0xff]  }
 0x132   :  { %v264_v44 = vadd.f32 1e-05, %v260_v42  ;;  %v261_v45 = vmax.f32 %v259_v43, 0.0  ;;  %2799 = vst [vmem:[#allocation23_spill] sm:$0xff] %v2594_v37  ;;  %2800 = vst [vmem:[#allocation24_spill] sm:$0xff] %v2598_v38 }
 0x133   :  { %v2600_v39 = vld [vmem:[#allocation10 + $0x90] ss:$8 sps:$4 sm:$0xff]   ;;  %v2602_v40 = vld [vmem:[#allocation10 + $0x84] ss:$8 sps:$4 sm:$0xff]   ;;  %v2606_v41 = vld [vmem:[#allocation10 + $0x80] ss:$8 sps:$4 sm:$0xff]  }
 0x134   :  { %2250 = vrsqrt.f32 %v264_v44  ;;  %v265_v46 = vadd.f32 1e-05, %v261_v45  ;;  %2801 = vst [vmem:[#allocation25_spill] sm:$0xff] %v2600_v39  ;;  %2802 = vst [vmem:[#allocation26_spill] sm:$0xff] %v2602_v40 }
 0x135   :  { %2803 = vst [vmem:[#allocation27_spill] sm:$0xff] %v2606_v41 }
 0x136   :  { %2252 = vrsqrt.f32 %v265_v46 }
 0x141   :  { %v2251_v48 = vpop.eup %2250 }
 0x142   :  { %v268_v49 = vmul.f32 %v2251_v48, %v262_v47 }
 0x143   :  { %v2253_v53 = vpop.eup %2252 }
 0x144   :  { %v269_v54 = vmul.f32 %v2253_v53, %v263_v50  ;;  %v270_v56 = vmax.f32 %v268_v49, 0.0 }
 0x146   :  { %v271_v57 = vmax.f32 %v269_v54, 0.0  ;;  %v272_v60 = vpack.c.bf16 %v270_v56, %v270_v56 }
 0x148   :  { %v273_v58 = vpack.c.bf16 %v271_v57, %v271_v57 }
 0x14a   :  { %498 = vmatprep.mubr.bf16.mxu1 %v273_v58 }
 0x14b   :  { %499 = vmatmul.mubr.bf16.vlgmr.msra.gmra.mxu1 %v272_v60 }
 0x14c   :  { %748 = vmatpush1.bf16.msra.mxu1 %v2517_v59 }
 0x14d   :  { %749 = vmatprep.subr.bf16.mxu1 %v2519_v61 }
 0x150   :  { %750 = vmatpush1.bf16.msra.mxu1 %v2522_v62 }
 0x151   :  { %751 = vmatprep.subr.bf16.mxu1 %v2525_v52 }
 0x154   :  { %752 = vmatpush1.bf16.msra.mxu1 %v2528_v55 }
 0x155   :  { %753 = vmatprep.subr.bf16.mxu1 %v2531_v63 }
 0x158   :  { %754 = vmatpush1.bf16.msra.mxu1 %v2534_v10 }
 0x159   :  { %755 = vmatprep.subr.bf16.mxu1 %v2537_v11 }
 0x15c   :  { %756 = vmatpush1.bf16.msra.mxu1 %v2540_v12 }
 0x15d   :  { %757 = vmatprep.subr.bf16.mxu1 %v2544_v14 }
 0x160   :  { %758 = vmatpush1.bf16.msra.mxu1 %v2546_v15 }
 0x161   :  { %759 = vmatprep.subr.bf16.mxu1 %v2550_v18 }
 0x164   :  { %760 = vmatpush1.bf16.msra.mxu1 %v2552_v19 }
 0x165   :  { %761 = vmatprep.subr.bf16.mxu1 %v2556_v21 }
 0x168   :  { %762 = vmatpush1.bf16.msra.mxu1 %v2558_v23 }
 0x169   :  { %763 = vmatprep.subr.bf16.mxu1 %v2562_v25 }
 0x16c   :  { %764 = vmatpush2.bf16.msra.mxu1 %v2564_v27 }
 0x16d   :  { %765 = vmatprep.subr.bf16.mxu1 %v2568_v28 }
 0x170   :  { %766 = vmatpush2.bf16.msra.mxu1 %v2570_v29 }
 0x171   :  { %767 = vmatprep.subr.bf16.mxu1 %v2574_v30 }
 0x174   :  { %768 = vmatpush2.bf16.msra.mxu1 %v2576_v31 }
 0x175   :  { %769 = vmatprep.subr.bf16.mxu1 %v2580_v32 }
 0x178   :  { %770 = vmatpush2.bf16.msra.mxu1 %v2582_v33 }
 0x179   :  { %771 = vmatprep.subr.bf16.mxu1 %v2586_v34 }
 0x17c   :  { %772 = vmatpush2.bf16.msra.mxu1 %v2588_v35 }
 0x17d   :  { %773 = vmatprep.subr.bf16.mxu1 %v2592_v36 }
 0x180   :  { %774 = vmatpush2.bf16.msra.mxu1 %v2594_v37 }
 0x181   :  { %775 = vmatprep.subr.bf16.mxu1 %v2598_v38 }
 0x184   :  { %776 = vmatpush2.bf16.msra.mxu1 %v2600_v39 }
 0x185   :  { %777 = vmatprep.subr.bf16.mxu1 %v2602_v40 }
 0x188   :  { %778 = vmatpush2.bf16.msra.mxu1 %v2606_v41 }
 0x189   :  { %834 = vmatprep.subr.bf16.mxu1 %v2466_v1 }
 0x20b   :  { %v500_v42 = vpop.f32.mrf.mxu1 }
 0x20c   :  { %v507_v43 = vrot.slane %v500_v42, 4  ;;  %v521_v44 = vmul.f32 %v500_v42, %v500_v42 }
 0x20d   :  { %v502_v45 = vpop.f32.mrf.mxu1 }
 0x20e   :  { %v508_v46 = vadd.f32 %v507_v43, %v500_v42  ;;  %v523_v47 = vrot.slane %v521_v44, 4  ;;  %v513_v48 = vrot.slane %v502_v45, 4  ;;  %v522_v49 = vmul.f32 %v502_v45, %v502_v45 }
 0x20f   :  { %v504_v50 = vpop.f32.mrf.mxu1 }
 0x210   :  { %v509_v53 = vrot.slane %v508_v46, 2  ;;  %v524_v54 = vadd.f32 %v523_v47, %v521_v44  ;;  %v514_v56 = vadd.f32 %v513_v48, %v502_v45  ;;  %v529_v57 = vrot.slane %v522_v49, 4 }
 0x211   :  { %v505_v58 = vpop.f32.mrf.mxu1 }
 0x212   :  { %v510_v60 = vadd.f32 %v509_v53, %v508_v46  ;;  %v525_v0 = vrot.slane %v524_v54, 2  ;;  %v515_v40 = vrot.slane %v514_v56, 2  ;;  %v530_v41 = vadd.f32 %v529_v57, %v522_v49 }
 0x214   :  { %v511_v39 = vrot.slane %v510_v60, 1  ;;  %v526_v1 = vadd.f32 %v525_v0, %v524_v54  ;;  %v516_v38 = vadd.f32 %v515_v40, %v514_v56  ;;  %v531_v37 = vrot.slane %v530_v41, 2 }
 0x216   :  { %v512_v36 = vadd.f32 %v511_v39, %v510_v60  ;;  %v527_v35 = vrot.slane %v526_v1, 1  ;;  %v517_v43 = vrot.slane %v516_v38, 1  ;;  %v532_v34 = vadd.f32 %v531_v37, %v530_v41 }
 0x218   :  { %v519_v33 = vmul.f32 0.125, %v512_v36  ;;  %v528_v32 = vadd.f32 %v527_v35, %v526_v1  ;;  %v518_v50 = vadd.f32 %v517_v43, %v516_v38  ;;  %v533_v31 = vrot.slane %v532_v34, 1 }
 0x21a   :  { %v535_v44 = vmul.f32 0.125, %v528_v32  ;;  %v537_v47 = vmul.f32 %v519_v33, %v519_v33  ;;  %v520_v48 = vmul.f32 0.125, %v518_v50  ;;  %v534_v58 = vadd.f32 %v533_v31, %v532_v34 }
 0x21b   :  { %v543_v54 = vsub.f32 %v500_v42, %v519_v33 }
 0x21c   :  { %v539_v46 = vsub.f32 %v535_v44, %v537_v47  ;;  %v538_v53 = vmul.f32 %v520_v48, %v520_v48  ;;  %v536_v30 = vmul.f32 0.125, %v534_v58  ;;  %v544_v35 = vsub.f32 %v502_v45, %v520_v48 }
 0x21e   :  { %v541_v49 = vmax.f32 %v539_v46, 0.0  ;;  %v540_v57 = vsub.f32 %v536_v30, %v538_v53  ;;  %v2804_v30 = vmov 0  }
 0x220   :  { %v545_v0 = vadd.f32 1e-05, %v541_v49  ;;  %v542_v40 = vmax.f32 %v540_v57, 0.0 }
 0x222   :  { %2254 = vrsqrt.f32 %v545_v0  ;;  %v546_v39 = vadd.f32 1e-05, %v542_v40 }
 0x224   :  { %2256 = vrsqrt.f32 %v546_v39 }
 0x22f   :  { %v2255_v37 = vpop.eup %2254 }
 0x230   :  { %v549_v36 = vmul.f32 %v2255_v37, %v543_v54 }
 0x231   :  { %v2257_v38 = vpop.eup %2256 }
 0x232   :  { %v550_v41 = vmul.f32 %v2257_v38, %v544_v35  ;;  %v551_v32 = vmax.f32 %v549_v36, 0.0 }
 0x234   :  { %v552_v56 = vmax.f32 %v550_v41, 0.0  ;;  %v553_v31 = vpack.c.bf16 %v551_v32, %v551_v32 }
 0x236   :  { %v554_v60 = vpack.c.bf16 %v552_v56, %v552_v56 }
 0x238   :  { %779 = vmatprep.mubr.bf16.mxu1 %v554_v60 }
 0x239   :  { %780 = vmatmul.mubr.bf16.vlgmr.msra.gmra.mxu1 %v553_v31 }
 0x23a   :  { %835 = vmatpush1.bf16.msra.mxu1 %v2468_v2  ;;  %866 = vmatprep.mubr.bf16.mxu1 %v2804_v30  ;;  %v832_v2 = vld [vmem:[#allocation5] sm:$0xff] }
 0x23b   :  { %836 = vmatprep.subr.bf16.mxu1 %v2471_v3  ;;  %v833_v3 = vpack.c.bf16 %v832_v2, %v832_v2 }
 0x23e   :  { %837 = vmatpush1.bf16.msra.mxu1 %v2474_v4  ;;  %v2805_v4 = vld [vmem:[#allocation16_spill] sm:$0xff] }
 0x23f   :  { %838 = vmatprep.subr.bf16.mxu1 %v2477_v5  ;;  %v2806_v5 = vld [vmem:[#allocation17_spill] sm:$0xff] }
 0x242   :  { %839 = vmatpush1.bf16.msra.mxu1 %v2480_v6  ;;  %v2807_v6 = vld [vmem:[#allocation18_spill] sm:$0xff] }
 0x243   :  { %840 = vmatprep.subr.bf16.mxu1 %v2483_v7  ;;  %v2808_v7 = vld [vmem:[#allocation19_spill] sm:$0xff] }
 0x246   :  { %841 = vmatpush1.bf16.msra.mxu1 %v2485_v8  ;;  %v2809_v8 = vld [vmem:[#allocation20_spill] sm:$0xff] }
 0x247   :  { %842 = vmatprep.subr.bf16.mxu1 %v2487_v9  ;;  %v2810_v9 = vld [vmem:[#allocation21_spill] sm:$0xff] }
 0x24a   :  { %843 = vmatpush1.bf16.msra.mxu1 %v2491_v13  ;;  %v2811_v13 = vld [vmem:[#allocation22_spill] sm:$0xff] }
 0x24b   :  { %844 = vmatprep.subr.bf16.mxu1 %v2495_v16  ;;  %v2812_v16 = vld [vmem:[#allocation23_spill] sm:$0xff] }
 0x24e   :  { %845 = vmatpush1.bf16.msra.mxu1 %v2497_v17  ;;  %v2813_v17 = vld [vmem:[#allocation24_spill] sm:$0xff] }
 0x24f   :  { %846 = vmatprep.subr.bf16.mxu1 %v2499_v20  ;;  %v2814_v20 = vld [vmem:[#allocation25_spill] sm:$0xff] }
 0x252   :  { %847 = vmatpush1.bf16.msra.mxu1 %v2503_v22  ;;  %v2815_v22 = vld [vmem:[#allocation26_spill] sm:$0xff] }
 0x253   :  { %848 = vmatprep.subr.bf16.mxu1 %v2505_v24  ;;  %v2816_v24 = vld [vmem:[#allocation27_spill] sm:$0xff] }
 0x256   :  { %849 = vmatpush1.bf16.msra.mxu1 %v2509_v26 }
 0x257   :  { %1012 = vmatprep.subr.bf16.mxu1 %v2514_v51 }
 0x259   :  { %867 = vmatmul.mubr.bf16.vlgmr.msra.gmra.mxu1 %v833_v3 }
 0x25a   :  { %1013 = vmatpush1.bf16.msra.mxu1 %v2517_v59 }
 0x25b   :  { %1014 = vmatprep.subr.bf16.mxu1 %v2519_v61 }
 0x25e   :  { %1015 = vmatpush1.bf16.msra.mxu1 %v2522_v62 }
 0x25f   :  { %1016 = vmatprep.subr.bf16.mxu1 %v2525_v52 }
 0x262   :  { %1017 = vmatpush1.bf16.msra.mxu1 %v2528_v55 }
 0x263   :  { %1018 = vmatprep.subr.bf16.mxu1 %v2531_v63 }
 0x266   :  { %1019 = vmatpush1.bf16.msra.mxu1 %v2534_v10 }
 0x267   :  { %1020 = vmatprep.subr.bf16.mxu1 %v2537_v11 }
 0x26a   :  { %1021 = vmatpush1.bf16.msra.mxu1 %v2540_v12 }
 0x26b   :  { %1022 = vmatprep.subr.bf16.mxu1 %v2544_v14 }
 0x26e   :  { %1023 = vmatpush1.bf16.msra.mxu1 %v2546_v15 }
 0x26f   :  { %1024 = vmatprep.subr.bf16.mxu1 %v2550_v18 }
 0x272   :  { %1025 = vmatpush1.bf16.msra.mxu1 %v2552_v19 }
 0x273   :  { %1026 = vmatprep.subr.bf16.mxu1 %v2556_v21 }
 0x276   :  { %1027 = vmatpush1.bf16.msra.mxu1 %v2558_v23 }
 0x277   :  { %1028 = vmatprep.subr.bf16.mxu1 %v2562_v25 }
 0x27a   :  { %1029 = vmatpush2.bf16.msra.mxu1 %v2564_v27 }
 0x27b   :  { %1030 = vmatprep.subr.bf16.mxu1 %v2568_v28 }
 0x27e   :  { %1031 = vmatpush2.bf16.msra.mxu1 %v2570_v29 }
 0x27f   :  { %1032 = vmatprep.subr.bf16.mxu1 %v2805_v4 }
 0x282   :  { %1033 = vmatpush2.bf16.msra.mxu1 %v2806_v5 }
 0x283   :  { %1034 = vmatprep.subr.bf16.mxu1 %v2807_v6 }
 0x286   :  { %1035 = vmatpush2.bf16.msra.mxu1 %v2808_v7 }
 0x287   :  { %1036 = vmatprep.subr.bf16.mxu1 %v2809_v8 }
 0x28a   :  { %1037 = vmatpush2.bf16.msra.mxu1 %v2810_v9 }
 0x28b   :  { %1038 = vmatprep.subr.bf16.mxu1 %v2811_v13 }
 0x28e   :  { %1039 = vmatpush2.bf16.msra.mxu1 %v2812_v16 }
 0x28f   :  { %1040 = vmatprep.subr.bf16.mxu1 %v2813_v17 }
 0x292   :  { %1041 = vmatpush2.bf16.msra.mxu1 %v2814_v20 }
 0x293   :  { %1042 = vmatprep.subr.bf16.mxu1 %v2815_v22 }
 0x296   :  { %1043 = vmatpush2.bf16.msra.mxu1 %v2816_v24 }
 0x2f9   :  { %v781_v26 = vpop.f32.mrf.mxu1 }
 0x2fa   :  { %v788_v51 = vrot.slane %v781_v26, 4  ;;  %v802_v59 = vmul.f32 %v781_v26, %v781_v26 }
 0x2fb   :  { %v2659_v61 = vpop.f32.mrf.mxu1 }
 0x2fc   :  { %v789_v62 = vadd.f32 %v788_v51, %v781_v26  ;;  %v804_v52 = vrot.slane %v802_v59, 4  ;;  %v794_v55 = vrot.slane %v2659_v61, 4  ;;  %v803_v63 = vmul.f32 %v2659_v61, %v2659_v61 }
 0x2fd   :  { %v785_v10 = vpop.f32.mrf.mxu1 }
 0x2fe   :  { %v790_v11 = vrot.slane %v789_v62, 2  ;;  %v805_v12 = vadd.f32 %v804_v52, %v802_v59  ;;  %v795_v19 = vadd.f32 %v794_v55, %v2659_v61  ;;  %v810_v21 = vrot.slane %v803_v63, 4 }
 0x2ff   :  { %v786_v14 = vpop.f32.mrf.mxu1 }
 0x300   :  { %v806_v15 = vrot.slane %v805_v12, 2  ;;  %v791_v18 = vadd.f32 %v790_v11, %v789_v62  ;;  %v796_v29 = vrot.slane %v795_v19, 2  ;;  %v811_v33 = vadd.f32 %v810_v21, %v803_v63 }
 0x302   :  { %v807_v23 = vadd.f32 %v806_v15, %v805_v12  ;;  %v792_v25 = vrot.slane %v791_v18, 1  ;;  %v797_v43 = vadd.f32 %v796_v29, %v795_v19  ;;  %v812_v50 = vrot.slane %v811_v33, 2 }
 0x304   :  { %v808_v27 = vrot.slane %v807_v23, 1  ;;  %v793_v28 = vadd.f32 %v792_v25, %v791_v18  ;;  %v813_v48 = vadd.f32 %v812_v50, %v811_v33  ;;  %v798_v58 = vrot.slane %v797_v43, 1 }
 0x306   :  { %v800_v34 = vmul.f32 0.125, %v793_v28  ;;  %v809_v42 = vadd.f32 %v808_v27, %v807_v23  ;;  %v814_v53 = vrot.slane %v813_v48, 1  ;;  %v799_v49 = vadd.f32 %v798_v58, %v797_v43 }
 0x308   :  { %v816_v45 = vmul.f32 0.125, %v809_v42  ;;  %v818_v1 = vmul.f32 %v800_v34, %v800_v34  ;;  %v815_v57 = vadd.f32 %v814_v53, %v813_v48  ;;  %v801_v0 = vmul.f32 0.125, %v799_v49 }
 0x309   :  { %v824_v2 = vsub.f32 %v781_v26, %v800_v34 }
 0x30a   :  { %v820_v44 = vsub.f32 %v816_v45, %v818_v1  ;;  %v817_v39 = vmul.f32 0.125, %v815_v57  ;;  %v819_v54 = vmul.f32 %v801_v0, %v801_v0  ;;  %v825_v50 = vsub.f32 %v2659_v61, %v801_v0 }
 0x30c   :  { %v822_v47 = vmax.f32 %v820_v44, 0.0  ;;  %v821_v3 = vsub.f32 %v817_v39, %v819_v54 }
 0x30e   :  { %v826_v46 = vadd.f32 1e-05, %v822_v47  ;;  %v823_v24 = vmax.f32 %v821_v3, 0.0 }
 0x310   :  { %2258 = vrsqrt.f32 %v826_v46  ;;  %v827_v11 = vadd.f32 1e-05, %v823_v24 }
 0x312   :  { %2260 = vrsqrt.f32 %v827_v11 }
 0x319   :  { %v868_v40 = vpop.f32.mrf.mxu1 }
 0x31a   :  { %v875_v37 = vrot.slane %v868_v40, 4  ;;  %v889_v36 = vmul.f32 %v868_v40, %v868_v40 }
 0x31b   :  { %v870_v35 = vpop.f32.mrf.mxu1 }
 0x31c   :  { %v876_v38 = vadd.f32 %v875_v37, %v868_v40  ;;  %v891_v41 = vrot.slane %v889_v36, 4  ;;  %v881_v32 = vrot.slane %v870_v35, 4  ;;  %v890_v56 = vmul.f32 %v870_v35, %v870_v35 }
 0x31d   :  { %v2259_v60 = vpop.eup %2258  ;;  %v872_v31 = vpop.f32.mrf.mxu1 }
 0x31e   :  { %v877_v4 = vrot.slane %v876_v38, 2  ;;  %v892_v5 = vadd.f32 %v891_v41, %v889_v36  ;;  %v882_v6 = vadd.f32 %v881_v32, %v870_v35  ;;  %v897_v7 = vrot.slane %v890_v56, 4 }
 0x31f   :  { %v873_v8 = vpop.f32.mrf.mxu1  ;;  %v830_v9 = vmul.f32 %v2259_v60, %v824_v2  ;;  %v2261_v43 = vpop.eup %2260 }
 0x320   :  { %v878_v13 = vadd.f32 %v877_v4, %v876_v38  ;;  %v893_v16 = vrot.slane %v892_v5, 2  ;;  %v883_v17 = vrot.slane %v882_v6, 2  ;;  %v898_v20 = vadd.f32 %v897_v7, %v890_v56 }
 0x321   :  { %v1097_v22 = vpack.c.bf16 %v830_v9, %v830_v9  ;;  %v831_v44 = vmul.f32 %v2261_v43, %v825_v50 }
 0x322   :  { %v879_v51 = vrot.slane %v878_v13, 1  ;;  %v894_v59 = vadd.f32 %v893_v16, %v892_v5  ;;  %v884_v62 = vadd.f32 %v883_v17, %v882_v6  ;;  %v899_v52 = vrot.slane %v898_v20, 2 }
 0x323   :  { %1101 = vxpose.xlu0.c.b16.start.end [1/1] (short) %v1097_v22, 128  ;;  %v1098_v46 = vpack.c.bf16 %v831_v44, %v831_v44 }
 0x324   :  { %v880_v55 = vadd.f32 %v879_v51, %v878_v13  ;;  %v895_v26 = vrot.slane %v894_v59, 1  ;;  %v885_v63 = vrot.slane %v884_v62, 1  ;;  %v900_v10 = vadd.f32 %v899_v52, %v898_v20 }
 0x326   :  { %v887_v12 = vmul.f32 0.125, %v880_v55  ;;  %v896_v14 = vadd.f32 %v895_v26, %v894_v59  ;;  %v886_v15 = vadd.f32 %v885_v63, %v884_v62  ;;  %v901_v18 = vrot.slane %v900_v10, 1 }
 0x328   :  { %v903_v19 = vmul.f32 0.125, %v896_v14  ;;  %v905_v21 = vmul.f32 %v887_v12, %v887_v12  ;;  %v888_v23 = vmul.f32 0.125, %v886_v15  ;;  %v902_v25 = vadd.f32 %v901_v18, %v900_v10 }
 0x329   :  { %v911_v47 = vsub.f32 %v868_v40, %v887_v12 }
 0x32a   :  { %v907_v27 = vsub.f32 %v903_v19, %v905_v21  ;;  %v906_v28 = vmul.f32 %v888_v23, %v888_v23  ;;  %v904_v29 = vmul.f32 0.125, %v902_v25  ;;  %v912_v53 = vsub.f32 %v870_v35, %v888_v23 }
 0x32c   :  { %v909_v33 = vmax.f32 %v907_v27, 0.0  ;;  %v908_v34 = vsub.f32 %v904_v29, %v906_v28 }
 0x32e   :  { %v913_v42 = vadd.f32 1e-05, %v909_v33  ;;  %v910_v45 = vmax.f32 %v908_v34, 0.0 }
 0x330   :  { %2262 = vrsqrt.f32 %v913_v42  ;;  %v914_v1 = vadd.f32 1e-05, %v910_v45 }
 0x332   :  { %2264 = vrsqrt.f32 %v914_v1 }
 0x33d   :  { %v2263_v48 = vpop.eup %2262 }
 0x33e   :  { %v917_v58 = vmul.f32 %v2263_v48, %v911_v47 }
 0x33f   :  { %v2265_v49 = vpop.eup %2264 }
 0x340   :  { %1117 = vxpose.xlu0.c.b16.start.end [1/1] (short) %v1098_v46, 128  ;;  %v918_v57 = vmul.f32 %v2265_v49, %v912_v53  ;;  %v919_v39 = vmax.f32 %v917_v58, 0.0 }
 0x342   :  { %v920_v54 = vmax.f32 %v918_v57, 0.0  ;;  %v921_v36 = vpack.c.bf16 %v919_v39, %v919_v39 }
 0x344   :  { %v922_v37 = vpack.c.bf16 %v920_v54, %v920_v54 }
 0x346   :  { %955 = vmatprep.mubr.bf16.mxu0 %v922_v37 }
 0x347   :  { %956 = vmatmul.mubr.bf16.vlgmr.msra.gmra.mxu0 %v921_v36 }
 0x348   :  { %1221 = vmatprep.mubr.bf16.mxu0 %v2804_v30 }
 0x407   :  { %v957_v38 = vpop.f32.mrf.mxu0 }
 0x408   :  { %v964_v41 = vrot.slane %v957_v38, 4  ;;  %v978_v61 = vmul.f32 %v957_v38, %v957_v38 }
 0x409   :  { %v959_v0 = vpop.f32.mrf.mxu0 }
 0x40a   :  { %v965_v40 = vadd.f32 %v964_v41, %v957_v38  ;;  %v980_v32 = vrot.slane %v978_v61, 4  ;;  %v970_v56 = vrot.slane %v959_v0, 4  ;;  %v979_v60 = vmul.f32 %v959_v0, %v959_v0 }
 0x40b   :  { %v961_v35 = vpop.f32.mrf.mxu0 }
 0x40c   :  { %v966_v31 = vrot.slane %v965_v40, 2  ;;  %v981_v2 = vadd.f32 %v980_v32, %v978_v61  ;;  %v971_v3 = vadd.f32 %v970_v56, %v959_v0  ;;  %v986_v4 = vrot.slane %v979_v60, 4 }
 0x40d   :  { %v962_v5 = vpop.f32.mrf.mxu0 }
 0x40e   :  { %v967_v6 = vadd.f32 %v966_v31, %v965_v40  ;;  %v982_v7 = vrot.slane %v981_v2, 2  ;;  %v972_v8 = vrot.slane %v971_v3, 2  ;;  %v987_v9 = vadd.f32 %v986_v4, %v979_v60 }
 0x410   :  { %v968_v13 = vrot.slane %v967_v6, 1  ;;  %v983_v16 = vadd.f32 %v982_v7, %v981_v2  ;;  %v973_v17 = vadd.f32 %v972_v8, %v971_v3  ;;  %v988_v20 = vrot.slane %v987_v9, 2 }
 0x412   :  { %v969_v22 = vadd.f32 %v968_v13, %v967_v6  ;;  %v984_v24 = vrot.slane %v983_v16, 1  ;;  %v974_v51 = vrot.slane %v973_v17, 1  ;;  %v989_v59 = vadd.f32 %v988_v20, %v987_v9 }
 0x414   :  { %v976_v62 = vmul.f32 0.125, %v969_v22  ;;  %v985_v52 = vadd.f32 %v984_v24, %v983_v16  ;;  %v975_v55 = vadd.f32 %v974_v51, %v973_v17  ;;  %v990_v26 = vrot.slane %v989_v59, 1 }
 0x416   :  { %v992_v63 = vmul.f32 0.125, %v985_v52  ;;  %v994_v10 = vmul.f32 %v976_v62, %v976_v62  ;;  %v977_v11 = vmul.f32 0.125, %v975_v55  ;;  %v991_v12 = vadd.f32 %v990_v26, %v989_v59 }
 0x417   :  { %v1000_v28 = vsub.f32 %v957_v38, %v976_v62 }
 0x418   :  { %v996_v14 = vsub.f32 %v992_v63, %v994_v10  ;;  %v995_v15 = vmul.f32 %v977_v11, %v977_v11  ;;  %v993_v18 = vmul.f32 0.125, %v991_v12  ;;  %v1001_v34 = vsub.f32 %v959_v0, %v977_v11 }
 0x41a   :  { %v998_v19 = vmax.f32 %v996_v14, 0.0  ;;  %v997_v21 = vsub.f32 %v993_v18, %v995_v15 }
 0x41c   :  { %v1002_v23 = vadd.f32 1e-05, %v998_v19  ;;  %v999_v25 = vmax.f32 %v997_v21, 0.0 }
 0x41e   :  { %2266 = vrsqrt.f32 %v1002_v23  ;;  %v1003_v27 = vadd.f32 1e-05, %v999_v25  ;;  %v1109_v25 = vpop.trf.xlu0 }
 0x420   :  { %2268 = vrsqrt.f32 %v1003_v27 }
 0x422   :  { %v1110_v27 = vpop.trf.xlu0 }
 0x42b   :  { %v2267_v29 = vpop.eup %2266 }
 0x42c   :  { %v1006_v33 = vmul.f32 %v2267_v29, %v1000_v28  ;;  %v1111_v28 = vpop.trf.xlu0 }
 0x42d   :  { %v2269_v42 = vpop.eup %2268 }
 0x42e   :  { %v1007_v45 = vmul.f32 %v2269_v42, %v1001_v34  ;;  %v1008_v1 = vmax.f32 %v1006_v33, 0.0 }
 0x430   :  { %v1009_v43 = vmax.f32 %v1007_v45, 0.0  ;;  %v1010_v44 = vpack.c.bf16 %v1008_v1, %v1008_v1  ;;  %v1112_v29 = vpop.trf.xlu0 }
 0x432   :  { %v1011_v50 = vpack.c.bf16 %v1009_v43, %v1009_v43 }
 0x434   :  { %1044 = vmatprep.mubr.bf16.mxu1 %v1011_v50  ;;  %v1113_v33 = vpop.trf.xlu0 }
 0x435   :  { %1045 = vmatmul.mubr.bf16.vlgmr.msra.gmra.mxu1 %v1010_v44 }
 0x438   :  { %v1114_v34 = vpop.trf.xlu0 }
 0x43c   :  { %v1115_v42 = vpop.trf.xlu0 }
 0x440   :  { %v1116_v45 = vpop.trf.xlu0 }
 0x444   :  { %v1125_v1 = vpop.trf.xlu0 }
 0x448   :  { %v1126_v43 = vpop.trf.xlu0 }
 0x44c   :  { %v1127_v50 = vpop.trf.xlu0 }
 0x450   :  { %v1128_v44 = vpop.trf.xlu0 }
 0x4f5   :  { %v1046_v47 = vpop.f32.mrf.mxu1 }
 0x4f6   :  { %v1053_v48 = vrot.slane %v1046_v47, 4  ;;  %v1067_v58 = vmul.f32 %v1046_v47, %v1046_v47 }
 0x4f7   :  { %v1048_v46 = vpop.f32.mrf.mxu1 }
 0x4f8   :  { %v1054_v53 = vadd.f32 %v1053_v48, %v1046_v47  ;;  %v1069_v49 = vrot.slane %v1067_v58, 4  ;;  %v1059_v57 = vrot.slane %v1048_v46, 4  ;;  %v1068_v39 = vmul.f32 %v1048_v46, %v1048_v46 }
 0x4f9   :  { %v1050_v54 = vpop.f32.mrf.mxu1 }
 0x4fa   :  { %v1055_v37 = vrot.slane %v1054_v53, 2  ;;  %v1070_v36 = vadd.f32 %v1069_v49, %v1067_v58  ;;  %v1060_v38 = vadd.f32 %v1059_v57, %v1048_v46  ;;  %v1075_v41 = vrot.slane %v1068_v39, 4 }
 0x4fb   :  { %v1051_v61 = vpop.f32.mrf.mxu1 }
 0x4fc   :  { %v1056_v0 = vadd.f32 %v1055_v37, %v1054_v53  ;;  %v1071_v40 = vrot.slane %v1070_v36, 2  ;;  %v1061_v32 = vrot.slane %v1060_v38, 2  ;;  %v1076_v56 = vadd.f32 %v1075_v41, %v1068_v39 }
 0x4fd   :  { %v1446_v53 = vlaneseq }
 0x4fe   :  { %v1057_v60 = vrot.slane %v1056_v0, 1  ;;  %v1072_v35 = vadd.f32 %v1071_v40, %v1070_v36  ;;  %v1062_v31 = vadd.f32 %v1061_v32, %v1060_v38  ;;  %v1077_v2 = vrot.slane %v1076_v56, 2 }
 0x4ff   :  { %v2698_v57 = vshrl.u32 %v1446_v53, 7  ;;  %v2700_v39 = vand.u32 127, %v1446_v53 }
 0x500   :  { %v1058_v3 = vadd.f32 %v1057_v60, %v1056_v0  ;;  %v1073_v4 = vrot.slane %v1072_v35, 1  ;;  %v1063_v5 = vrot.slane %v1062_v31, 1  ;;  %v1078_v6 = vadd.f32 %v1077_v2, %v1076_v56 }
 0x501   :  { %vm1482_vm2 = vcmp.eq.s32.totalorder %v2698_v57, %v2700_v39  ;;  %v1452_v53 = vadd.s32 40, %v2698_v57 }
 0x502   :  { %v1065_v7 = vmul.f32 0.125, %v1058_v3  ;;  %v1074_v8 = vadd.f32 %v1073_v4, %v1072_v35  ;;  %v1064_v9 = vadd.f32 %v1063_v5, %v1062_v31  ;;  %v1079_v13 = vrot.slane %v1078_v6, 1 }
 0x503   :  { %vm1492_vm7 = vcmp.eq.s32.totalorder %v1452_v53, %v2700_v39 }
 0x504   :  { %v1081_v16 = vmul.f32 0.125, %v1074_v8  ;;  %v1083_v17 = vmul.f32 %v1065_v7, %v1065_v7  ;;  %v1066_v20 = vmul.f32 0.125, %v1064_v9  ;;  %v1080_v22 = vadd.f32 %v1079_v13, %v1078_v6 }
 0x505   :  { %v1089_v10 = vsub.f32 %v1046_v47, %v1065_v7  ;;  %v1129_v47 = vpop.trf.xlu0  ;;  %v1449_v6 = vadd.s32 16, %v2698_v57 }
 0x506   :  { %v1085_v24 = vsub.f32 %v1081_v16, %v1083_v17  ;;  %v1084_v51 = vmul.f32 %v1066_v20, %v1066_v20  ;;  %v1082_v59 = vmul.f32 0.125, %v1080_v22  ;;  %v1090_v14 = vsub.f32 %v1048_v46, %v1066_v20 }
 0x507   :  { %vm1486_vm4 = vcmp.eq.s32.totalorder %v1449_v6, %v2700_v39 }
 0x508   :  { %v1087_v62 = vmax.f32 %v1085_v24, 0.0  ;;  %v1086_v52 = vsub.f32 %v1082_v59, %v1084_v51 }
 0x509   :  { %v1130_v48 = vpop.trf.xlu0 }
 0x50a   :  { %v1091_v55 = vadd.f32 1e-05, %v1087_v62  ;;  %v1088_v26 = vmax.f32 %v1086_v52, 0.0 }
 0x50c   :  { %2270 = vrsqrt.f32 %v1091_v55  ;;  %v1092_v63 = vadd.f32 1e-05, %v1088_v26  ;;  %v1450_v55 = vadd.s32 24, %v2698_v57 }
 0x50d   :  { %v1131_v58 = vpop.trf.xlu0 }
 0x50e   :  { %2272 = vrsqrt.f32 %v1092_v63  ;;  %vm1488_vm5 = vcmp.eq.s32.totalorder %v1450_v55, %v2700_v39 }
 0x511   :  { %v1132_v46 = vpop.trf.xlu0 }
 0x519   :  { %v2271_v11 = vpop.eup %2270 }
 0x51a   :  { %v1095_v12 = vmul.f32 %v2271_v11, %v1089_v10 }
 0x51b   :  { %v2273_v15 = vpop.eup %2272 }
 0x51c   :  { %v1096_v18 = vmul.f32 %v2273_v15, %v1090_v14  ;;  %v1099_v19 = vpack.c.bf16 %v1095_v12, %v1095_v12 }
 0x51e   :  { %v1100_v21 = vpack.c.bf16 %v1096_v18, %v1096_v18  ;;  %v1184_v23 = vsel %vm1182_vm0, %v1099_v19, 0 }
 0x520   :  { %2038 = vmatprep.subr.msk.bf16.mxu0 %vm1182_vm0, %v1100_v21 }
 0x521   :  { %1204 = vmatpush1.bf16.msra.mxu0 %v1184_v23 }
 0x524   :  { %2039 = vmatmul.mubr.msk.bf16.vlgmr.msra.gmra.mxu0 %vm1133_vm1, %v1109_v25 }
 0x525   :  { %1231 = vmatprep.mubr.bf16.mxu0 %v2804_v30 }
 0x52c   :  { %2040 = vmatmul.mubr.msk.bf16.gmra.mxu0 %vm1133_vm1, %v1110_v27 }
 0x52d   :  { %1241 = vmatprep.mubr.bf16.mxu0 %v2804_v30 }
 0x534   :  { %2041 = vmatmul.mubr.msk.bf16.gmra.mxu0 %vm1133_vm1, %v1111_v28  ;;  %v1451_v28 = vadd.s32 32, %v2698_v57 }
 0x535   :  { %1251 = vmatprep.mubr.bf16.mxu0 %v2804_v30 }
 0x536   :  { %vm1490_vm6 = vcmp.eq.s32.totalorder %v1451_v28, %v2700_v39 }
 0x53c   :  { %2042 = vmatmul.mubr.msk.bf16.gmra.mxu0 %vm1133_vm1, %v1112_v29 }
 0x53d   :  { %1261 = vmatprep.mubr.bf16.mxu0 %v2804_v30 }
 0x544   :  { %2043 = vmatmul.mubr.msk.bf16.gmra.mxu0 %vm1133_vm1, %v1113_v33 }
 0x545   :  { %1271 = vmatprep.mubr.bf16.mxu0 %v2804_v30 }
 0x54c   :  { %2044 = vmatmul.mubr.msk.bf16.gmra.mxu0 %vm1133_vm1, %v1114_v34 }
 0x54d   :  { %1281 = vmatprep.mubr.bf16.mxu0 %v2804_v30 }
 0x554   :  { %2045 = vmatmul.mubr.msk.bf16.gmra.mxu0 %vm1133_vm1, %v1115_v42 }
 0x555   :  { %1291 = vmatprep.mubr.bf16.mxu0 %v2804_v30 }
 0x55c   :  { %2046 = vmatmul.mubr.msk.bf16.gmra.mxu0 %vm1133_vm1, %v1116_v45 }
 0x55d   :  { %1301 = vmatprep.mubr.bf16.mxu0 %v2804_v30 }
 0x564   :  { %2047 = vmatmul.mubr.msk.bf16.gmra.mxu0 %vm1133_vm1, %v1125_v1 }
 0x565   :  { %1311 = vmatprep.mubr.bf16.mxu0 %v2804_v30 }
 0x56c   :  { %2048 = vmatmul.mubr.msk.bf16.gmra.mxu0 %vm1133_vm1, %v1126_v43 }
 0x56d   :  { %1321 = vmatprep.mubr.bf16.mxu0 %v2804_v30 }
 0x574   :  { %2049 = vmatmul.mubr.msk.bf16.gmra.mxu0 %vm1133_vm1, %v1127_v50 }
 0x575   :  { %1331 = vmatprep.mubr.bf16.mxu0 %v2804_v30 }
 0x57c   :  { %2050 = vmatmul.mubr.msk.bf16.gmra.mxu0 %vm1133_vm1, %v1128_v44 }
 0x57d   :  { %1341 = vmatprep.mubr.bf16.mxu0 %v2804_v30 }
 0x584   :  { %2051 = vmatmul.mubr.msk.bf16.gmra.mxu0 %vm1133_vm1, %v1129_v47 }
 0x585   :  { %1351 = vmatprep.mubr.bf16.mxu0 %v2804_v30 }
 0x58c   :  { %2052 = vmatmul.mubr.msk.bf16.gmra.mxu0 %vm1133_vm1, %v1130_v48 }
 0x58d   :  { %1361 = vmatprep.mubr.bf16.mxu0 %v2804_v30 }
 0x594   :  { %2053 = vmatmul.mubr.msk.bf16.gmra.mxu0 %vm1133_vm1, %v1131_v58 }
 0x595   :  { %1371 = vmatprep.mubr.bf16.mxu0 %v2804_v30  ;;  %v1448_v30 = vadd.s32 8, %v2698_v57 }
 0x597   :  { %vm1484_vm3 = vcmp.eq.s32.totalorder %v1448_v30, %v2700_v39 }
 0x59c   :  { %2054 = vmatmul.mubr.msk.bf16.gmra.mxu0 %vm1133_vm1, %v1132_v46 }
 0x5e4   :  { %v1223_v49 = vpop.f32.mrf.mxu0 }
 0x5e5   :  { %v1382_v54 = vmul.f32 0.125, %v1223_v49 }
 0x5e6   :  { %v1225_v37 = vpop.f32.mrf.mxu0 }
 0x5e7   :  { %v2055_v36 = vadd.f32 -1.0, %v1382_v54  ;;  %v1674_v38 = vmul.f32 %v1382_v54, %v1382_v54  ;;  %v1383_v41 = vmul.f32 0.125, %v1225_v37 }
 0x5e8   :  { %v1227_v61 = vpop.f32.mrf.mxu0 }
 0x5e9   :  { %v1610_v0 = vmul.f32 %v2055_v36, %v2055_v36  ;;  %v1738_v40 = vmul.f32 0.005, %v1674_v38  ;;  %v1675_v32 = vmul.f32 %v1383_v41, %v1383_v41  ;;  %v1384_v56 = vmul.f32 0.125, %v1227_v61 }
 0x5ea   :  { %v1229_v60 = vpop.f32.mrf.mxu0 }
 0x5eb   :  { %v1802_v35 = vsel %vm1482_vm2, %v1610_v0, %v1738_v40  ;;  %v1739_v31 = vmul.f32 0.005, %v1675_v32  ;;  %v2057_v2 = vadd.f32 -1.0, %v1384_v56  ;;  %v1676_v3 = vmul.f32 %v1384_v56, %v1384_v56 }
 0x5ec   :  { %v1385_v4 = vmul.f32 0.125, %v1229_v60  ;;  %v1233_v5 = vpop.f32.mrf.mxu0 }
 0x5ed   :  { %v1866_v7 = vadd.f32 %v1802_v35, %v1739_v31  ;;  %v1612_v8 = vmul.f32 %v2057_v2, %v2057_v2  ;;  %v1740_v9 = vmul.f32 0.005, %v1676_v3  ;;  %v1386_v13 = vmul.f32 0.125, %v1233_v5 }
 0x5ee   :  { %v1677_v16 = vmul.f32 %v1385_v4, %v1385_v4  ;;  %v1235_v17 = vpop.f32.mrf.mxu0  ;;  %v1453_v35 = vadd.s32 48, %v2698_v57 }
 0x5ef   :  { %v1804_v20 = vsel %vm1484_vm3, %v1612_v8, %v1740_v9  ;;  %v2059_v22 = vadd.f32 -1.0, %v1386_v13  ;;  %v1678_v24 = vmul.f32 %v1386_v13, %v1386_v13  ;;  %v1387_v51 = vmul.f32 0.125, %v1235_v17 }
 0x5f0   :  { %v1867_v59 = vadd.f32 %v1866_v7, %v1804_v20  ;;  %v1741_v62 = vmul.f32 0.005, %v1677_v16  ;;  %v1237_v52 = vpop.f32.mrf.mxu0  ;;  %vm1494_vm8 = vcmp.eq.s32.totalorder %v1453_v35, %v2700_v39 }
 0x5f1   :  { %v1614_v26 = vmul.f32 %v2059_v22, %v2059_v22  ;;  %v1742_v63 = vmul.f32 0.005, %v1678_v24  ;;  %v1679_v10 = vmul.f32 %v1387_v51, %v1387_v51  ;;  %v1388_v11 = vmul.f32 0.125, %v1237_v52 }
 0x5f2   :  { %v1868_v12 = vadd.f32 %v1867_v59, %v1741_v62  ;;  %v1239_v14 = vpop.f32.mrf.mxu0  ;;  %v1454_v22 = vadd.s32 56, %v2698_v57 }
 0x5f3   :  { %v1743_v15 = vmul.f32 0.005, %v1679_v10  ;;  %v1806_v18 = vsel %vm1486_vm4, %v1614_v26, %v1742_v63  ;;  %v2061_v19 = vadd.f32 -1.0, %v1388_v11  ;;  %v1680_v21 = vmul.f32 %v1388_v11, %v1388_v11 }
 0x5f4   :  { %v1869_v23 = vadd.f32 %v1868_v12, %v1806_v18  ;;  %v1389_v25 = vmul.f32 0.125, %v1239_v14  ;;  %v1243_v27 = vpop.f32.mrf.mxu0  ;;  %vm1496_vm9 = vcmp.eq.s32.totalorder %v1454_v22, %v2700_v39  ;;  %v1455_v18 = vadd.s32 64, %v2698_v57 }
 0x5f5   :  { %v1616_v29 = vmul.f32 %v2061_v19, %v2061_v19  ;;  %v1744_v33 = vmul.f32 0.005, %v1680_v21  ;;  %v1390_v34 = vmul.f32 0.125, %v1243_v27 }
 0x5f6   :  { %v1870_v42 = vadd.f32 %v1869_v23, %v1743_v15  ;;  %v1681_v45 = vmul.f32 %v1389_v25, %v1389_v25  ;;  %v1245_v1 = vpop.f32.mrf.mxu0  ;;  %vm1498_vm10 = vcmp.eq.s32.totalorder %v1455_v18, %v2700_v39 }
 0x5f7   :  { %v1808_v43 = vsel %vm1488_vm5, %v1616_v29, %v1744_v33  ;;  %v2063_v50 = vadd.f32 -1.0, %v1390_v34  ;;  %v1682_v44 = vmul.f32 %v1390_v34, %v1390_v34  ;;  %v1391_v47 = vmul.f32 0.125, %v1245_v1 }
 0x5f8   :  { %v1745_v48 = vmul.f32 0.005, %v1681_v45  ;;  %v1871_v58 = vadd.f32 %v1870_v42, %v1808_v43  ;;  %v1247_v46 = vpop.f32.mrf.mxu0 }
 0x5f9   :  { %v1618_v49 = vmul.f32 %v2063_v50, %v2063_v50  ;;  %v1746_v54 = vmul.f32 0.005, %v1682_v44  ;;  %v1683_v37 = vmul.f32 %v1391_v47, %v1391_v47  ;;  %v1392_v36 = vmul.f32 0.125, %v1247_v46 }
 0x5fa   :  { %v1872_v38 = vadd.f32 %v1871_v58, %v1745_v48  ;;  %v1249_v41 = vpop.f32.mrf.mxu0  ;;  %v1456_v50 = vadd.s32 72, %v2698_v57 }
 0x5fb   :  { %v1747_v61 = vmul.f32 0.005, %v1683_v37  ;;  %v1810_v30 = vsel %vm1490_vm6, %v1618_v49, %v1746_v54  ;;  %v2065_v0 = vadd.f32 -1.0, %v1392_v36  ;;  %v1684_v40 = vmul.f32 %v1392_v36, %v1392_v36 }
 0x5fc   :  { %v1873_v32 = vadd.f32 %v1872_v38, %v1810_v30  ;;  %v1393_v56 = vmul.f32 0.125, %v1249_v41  ;;  %v1253_v60 = vpop.f32.mrf.mxu0  ;;  %vm1500_vm11 = vcmp.eq.s32.totalorder %v1456_v50, %v2700_v39  ;;  %v1457_v30 = vadd.s32 80, %v2698_v57 }
 0x5fd   :  { %v1620_v31 = vmul.f32 %v2065_v0, %v2065_v0  ;;  %v1748_v2 = vmul.f32 0.005, %v1684_v40  ;;  %v1394_v3 = vmul.f32 0.125, %v1253_v60 }
 0x5fe   :  { %v1874_v4 = vadd.f32 %v1873_v32, %v1747_v61  ;;  %v1685_v5 = vmul.f32 %v1393_v56, %v1393_v56  ;;  %v1255_v6 = vpop.f32.mrf.mxu0  ;;  %vm1502_vm12 = vcmp.eq.s32.totalorder %v1457_v30, %v2700_v39 }
 0x5ff   :  { %v1812_v7 = vsel %vm1492_vm7, %v1620_v31, %v1748_v2  ;;  %v2067_v8 = vadd.f32 -1.0, %v1394_v3  ;;  %v1686_v9 = vmul.f32 %v1394_v3, %v1394_v3  ;;  %v1395_v13 = vmul.f32 0.125, %v1255_v6 }
 0x600   :  { %v1749_v16 = vmul.f32 0.005, %v1685_v5  ;;  %v1875_v17 = vadd.f32 %v1874_v4, %v1812_v7  ;;  %v1257_v20 = vpop.f32.mrf.mxu0 }
 0x601   :  { %v1622_v24 = vmul.f32 %v2067_v8, %v2067_v8  ;;  %v1750_v51 = vmul.f32 0.005, %v1686_v9  ;;  %v1687_v59 = vmul.f32 %v1395_v13, %v1395_v13  ;;  %v1396_v62 = vmul.f32 0.125, %v1257_v20 }
 0x602   :  { %v1876_v52 = vadd.f32 %v1875_v17, %v1749_v16  ;;  %v1259_v55 = vpop.f32.mrf.mxu0  ;;  %v1458_v8 = vadd.s32 88, %v2698_v57 }
 0x603   :  { %v1751_v26 = vmul.f32 0.005, %v1687_v59  ;;  %v1814_v63 = vsel %vm1494_vm8, %v1622_v24, %v1750_v51  ;;  %v2069_v10 = vadd.f32 -1.0, %v1396_v62  ;;  %v1688_v11 = vmul.f32 %v1396_v62, %v1396_v62 }
 0x604   :  { %v1877_v12 = vadd.f32 %v1876_v52, %v1814_v63  ;;  %v1397_v14 = vmul.f32 0.125, %v1259_v55  ;;  %v1263_v15 = vpop.f32.mrf.mxu0  ;;  %vm1504_vm13 = vcmp.eq.s32.totalorder %v1458_v8, %v2700_v39  ;;  %v1459_v63 = vadd.s32 96, %v2698_v57 }
 0x605   :  { %v1624_v19 = vmul.f32 %v2069_v10, %v2069_v10  ;;  %v1752_v21 = vmul.f32 0.005, %v1688_v11  ;;  %v1398_v23 = vmul.f32 0.125, %v1263_v15 }
 0x606   :  { %v1878_v25 = vadd.f32 %v1877_v12, %v1751_v26  ;;  %v1689_v27 = vmul.f32 %v1397_v14, %v1397_v14  ;;  %v1265_v28 = vpop.f32.mrf.mxu0  ;;  %vm1506_vm14 = vcmp.eq.s32.totalorder %v1459_v63, %v2700_v39  ;;  %v1463_v63 = vadd.s32 128, %v2698_v57 }
 0x607   :  { %v1816_v29 = vsel %vm1496_vm9, %v1624_v19, %v1752_v21  ;;  %v2071_v33 = vadd.f32 -1.0, %v1398_v23  ;;  %v1690_v34 = vmul.f32 %v1398_v23, %v1398_v23  ;;  %v1399_v42 = vmul.f32 0.125, %v1265_v28 }
 0x608   :  { %v1753_v45 = vmul.f32 0.005, %v1689_v27  ;;  %v1879_v1 = vadd.f32 %v1878_v25, %v1816_v29  ;;  %v1267_v43 = vpop.f32.mrf.mxu0 }
 0x609   :  { %v1626_v44 = vmul.f32 %v2071_v33, %v2071_v33  ;;  %v1754_v47 = vmul.f32 0.005, %v1690_v34  ;;  %v1691_v48 = vmul.f32 %v1399_v42, %v1399_v42  ;;  %v1400_v58 = vmul.f32 0.125, %v1267_v43 }
 0x60a   :  { %v1880_v46 = vadd.f32 %v1879_v1, %v1753_v45  ;;  %v1269_v53 = vpop.f32.mrf.mxu0  ;;  %v1460_v33 = vadd.s32 104, %v2698_v57 }
 0x60b   :  { %v1755_v49 = vmul.f32 0.005, %v1691_v48  ;;  %v1818_v54 = vsel %vm1498_vm10, %v1626_v44, %v1754_v47  ;;  %v2073_v37 = vadd.f32 -1.0, %v1400_v58  ;;  %v1692_v36 = vmul.f32 %v1400_v58, %v1400_v58 }
 0x60c   :  { %v1881_v38 = vadd.f32 %v1880_v46, %v1818_v54  ;;  %v1401_v41 = vmul.f32 0.125, %v1269_v53  ;;  %v1273_v61 = vpop.f32.mrf.mxu0  ;;  %vm1508_vm15 = vcmp.eq.s32.totalorder %v1460_v33, %v2700_v39  ;;  %v1461_v54 = vadd.s32 112, %v2698_v57 }
 0x60d   :  { %v1628_v0 = vmul.f32 %v2073_v37, %v2073_v37  ;;  %v1756_v40 = vmul.f32 0.005, %v1692_v36  ;;  %v1402_v32 = vmul.f32 0.125, %v1273_v61  ;;  %v1464_v33 = vadd.s32 136, %v2698_v57 }
 0x60e   :  { %v1882_v56 = vadd.f32 %v1881_v38, %v1755_v49  ;;  %v1693_v60 = vmul.f32 %v1401_v41, %v1401_v41  ;;  %v1275_v35 = vpop.f32.mrf.mxu0  ;;  %vm1510_vm0 = vcmp.eq.s32.totalorder %v1461_v54, %v2700_v39 }
 0x60f   :  { %v1820_v31 = vsel %vm1500_vm11, %v1628_v0, %v1756_v40  ;;  %v2075_v2 = vadd.f32 -1.0, %v1402_v32  ;;  %v1694_v3 = vmul.f32 %v1402_v32, %v1402_v32  ;;  %v1403_v4 = vmul.f32 0.125, %v1275_v35 }
 0x610   :  { %v1757_v5 = vmul.f32 0.005, %v1693_v60  ;;  %v1883_v6 = vadd.f32 %v1882_v56, %v1820_v31  ;;  %v1277_v7 = vpop.f32.mrf.mxu0 }
 0x611   :  { %v1630_v9 = vmul.f32 %v2075_v2, %v2075_v2  ;;  %v1758_v13 = vmul.f32 0.005, %v1694_v3  ;;  %v1695_v16 = vmul.f32 %v1403_v4, %v1403_v4  ;;  %v1404_v17 = vmul.f32 0.125, %v1277_v7 }
 0x612   :  { %v1884_v20 = vadd.f32 %v1883_v6, %v1757_v5  ;;  %v1279_v22 = vpop.f32.mrf.mxu0  ;;  %v1462_v2 = vadd.s32 120, %v2698_v57 }
 0x613   :  { %v1759_v24 = vmul.f32 0.005, %v1695_v16  ;;  %v1822_v51 = vsel %vm1502_vm12, %v1630_v9, %v1758_v13  ;;  %v2077_v59 = vadd.f32 -1.0, %v1404_v17  ;;  %v1696_v62 = vmul.f32 %v1404_v17, %v1404_v17 }
 0x614   :  { %v1885_v52 = vadd.f32 %v1884_v20, %v1822_v51  ;;  %v1405_v55 = vmul.f32 0.125, %v1279_v22  ;;  %v1283_v26 = vpop.f32.mrf.mxu0  ;;  %vm1512_vm1 = vcmp.eq.s32.totalorder %v1462_v2, %v2700_v39 }
 0x615   :  { %v1632_v10 = vmul.f32 %v2077_v59, %v2077_v59  ;;  %v1760_v11 = vmul.f32 0.005, %v1696_v62  ;;  %v1406_v12 = vmul.f32 0.125, %v1283_v26 }
 0x616   :  { %v1886_v14 = vadd.f32 %v1885_v52, %v1759_v24  ;;  %v1697_v15 = vmul.f32 %v1405_v55, %v1405_v55  ;;  %v1285_v18 = vpop.f32.mrf.mxu0 }
 0x617   :  { %v1824_v19 = vsel %vm1504_vm13, %v1632_v10, %v1760_v11  ;;  %v2079_v21 = vadd.f32 -1.0, %v1406_v12  ;;  %v1698_v23 = vmul.f32 %v1406_v12, %v1406_v12  ;;  %v1407_v25 = vmul.f32 0.125, %v1285_v18 }
 0x618   :  { %v1761_v27 = vmul.f32 0.005, %v1697_v15  ;;  %v1887_v28 = vadd.f32 %v1886_v14, %v1824_v19  ;;  %v1287_v29 = vpop.f32.mrf.mxu0  ;;  %v2736_v10 = vadd.s32 128, %v2700_v39 }
 0x619   :  { %v1634_v34 = vmul.f32 %v2079_v21, %v2079_v21  ;;  %v1762_v42 = vmul.f32 0.005, %v1698_v23  ;;  %v1699_v45 = vmul.f32 %v1407_v25, %v1407_v25  ;;  %v1408_v1 = vmul.f32 0.125, %v1287_v29 }
 0x61a   :  { %v1888_v43 = vadd.f32 %v1887_v28, %v1761_v27  ;;  %v1289_v50 = vpop.f32.mrf.mxu0  ;;  %vm1515_vm2 = vcmp.eq.s32.totalorder %v1463_v63, %v2736_v10  ;;  %vm1517_vm3 = vcmp.eq.s32.totalorder %v1464_v33, %v2736_v10 }
 0x61b   :  { %v1763_v44 = vmul.f32 0.005, %v1699_v45  ;;  %v1826_v47 = vsel %vm1506_vm14, %v1634_v34, %v1762_v42  ;;  %v2081_v48 = vadd.f32 -1.0, %v1408_v1  ;;  %v1700_v58 = vmul.f32 %v1408_v1, %v1408_v1 }
 0x61c   :  { %v1889_v46 = vadd.f32 %v1888_v43, %v1826_v47  ;;  %v1409_v53 = vmul.f32 0.125, %v1289_v50  ;;  %v1293_v49 = vpop.f32.mrf.mxu0 }
 0x61d   :  { %v1636_v37 = vmul.f32 %v2081_v48, %v2081_v48  ;;  %v1764_v36 = vmul.f32 0.005, %v1700_v58  ;;  %v1410_v38 = vmul.f32 0.125, %v1293_v49  ;;  %v1465_v49 = vadd.s32 144, %v2698_v57 }
 0x61e   :  { %v1890_v41 = vadd.f32 %v1889_v46, %v1763_v44  ;;  %v1701_v61 = vmul.f32 %v1409_v53, %v1409_v53  ;;  %v1295_v30 = vpop.f32.mrf.mxu0 }
 0x61f   :  { %v1828_v0 = vsel %vm1508_vm15, %v1636_v37, %v1764_v36  ;;  %v2083_v40 = vadd.f32 -1.0, %v1410_v38  ;;  %v1702_v32 = vmul.f32 %v1410_v38, %v1410_v38  ;;  %v1411_v56 = vmul.f32 0.125, %v1295_v30 }
 0x620   :  { %v1765_v60 = vmul.f32 0.005, %v1701_v61  ;;  %v1891_v35 = vadd.f32 %v1890_v41, %v1828_v0  ;;  %v1297_v31 = vpop.f32.mrf.mxu0  ;;  %vm1519_vm4 = vcmp.eq.s32.totalorder %v1465_v49, %v2736_v10 }
 0x621   :  { %v1638_v3 = vmul.f32 %v2083_v40, %v2083_v40  ;;  %v1766_v4 = vmul.f32 0.005, %v1702_v32  ;;  %v1703_v5 = vmul.f32 %v1411_v56, %v1411_v56  ;;  %v1412_v6 = vmul.f32 0.125, %v1297_v31 }
 0x622   :  { %v1892_v7 = vadd.f32 %v1891_v35, %v1765_v60  ;;  %v1299_v8 = vpop.f32.mrf.mxu0  ;;  %v1466_v31 = vadd.s32 152, %v2698_v57 }
 0x623   :  { %v1767_v9 = vmul.f32 0.005, %v1703_v5  ;;  %v1830_v13 = vsel %vm1510_vm0, %v1638_v3, %v1766_v4  ;;  %v2085_v16 = vadd.f32 -1.0, %v1412_v6  ;;  %v1704_v17 = vmul.f32 %v1412_v6, %v1412_v6 }
 0x624   :  { %v1893_v20 = vadd.f32 %v1892_v7, %v1830_v13  ;;  %v1413_v22 = vmul.f32 0.125, %v1299_v8  ;;  %v1303_v24 = vpop.f32.mrf.mxu0  ;;  %vm1521_vm5 = vcmp.eq.s32.totalorder %v1466_v31, %v2736_v10 }
 0x625   :  { %v1640_v51 = vmul.f32 %v2085_v16, %v2085_v16  ;;  %v1768_v59 = vmul.f32 0.005, %v1704_v17  ;;  %v1414_v62 = vmul.f32 0.125, %v1303_v24  ;;  %v1467_v24 = vadd.s32 160, %v2698_v57 }
 0x626   :  { %v1894_v52 = vadd.f32 %v1893_v20, %v1767_v9  ;;  %v1705_v55 = vmul.f32 %v1413_v22, %v1413_v22  ;;  %v1305_v26 = vpop.f32.mrf.mxu0 }
 0x627   :  { %v1832_v11 = vsel %vm1512_vm1, %v1640_v51, %v1768_v59  ;;  %v1706_v12 = vmul.f32 %v1414_v62, %v1414_v62  ;;  %v1415_v14 = vmul.f32 0.125, %v1305_v26  ;;  %vm1523_vm6 = vcmp.eq.s32.totalorder %v1467_v24, %v2736_v10 }
 0x628   :  { %v1769_v15 = vmul.f32 0.005, %v1705_v55  ;;  %v1895_v18 = vadd.f32 %v1894_v52, %v1832_v11  ;;  %v1307_v19 = vpop.f32.mrf.mxu0 }
 0x629   :  { %v1770_v21 = vmul.f32 0.005, %v1706_v12  ;;  %v2088_v23 = vadd.f32 -1.0, %v1415_v14  ;;  %v1707_v25 = vmul.f32 %v1415_v14, %v1415_v14  ;;  %v1416_v27 = vmul.f32 0.125, %v1307_v19 }
 0x62a   :  { %v1896_v28 = vadd.f32 %v1895_v18, %v1769_v15  ;;  %v1309_v29 = vpop.f32.mrf.mxu0 }
 0x62b   :  { %v1643_v34 = vmul.f32 %v2088_v23, %v2088_v23  ;;  %v1771_v42 = vmul.f32 0.005, %v1707_v25  ;;  %v1708_v39 = vmul.f32 %v1416_v27, %v1416_v27  ;;  %v1417_v45 = vmul.f32 0.125, %v1309_v29 }
 0x62c   :  { %v1897_v1 = vadd.f32 %v1896_v28, %v1770_v21  ;;  %v1313_v43 = vpop.f32.mrf.mxu0  ;;  %v1468_v21 = vadd.s32 168, %v2698_v57 }
 0x62d   :  { %v1772_v50 = vmul.f32 0.005, %v1708_v39  ;;  %v1835_v44 = vsel %vm1515_vm2, %v1643_v34, %v1771_v42  ;;  %v2090_v47 = vadd.f32 -1.0, %v1417_v45  ;;  %v1709_v48 = vmul.f32 %v1417_v45, %v1417_v45 }
 0x62e   :  { %v1898_v58 = vadd.f32 %v1897_v1, %v1835_v44  ;;  %v1418_v46 = vmul.f32 0.125, %v1313_v43  ;;  %v1315_v53 = vpop.f32.mrf.mxu0  ;;  %vm1525_vm7 = vcmp.eq.s32.totalorder %v1468_v21, %v2736_v10  ;;  %v1469_v44 = vadd.s32 176, %v2698_v57 }
 0x62f   :  { %v1645_v54 = vmul.f32 %v2090_v47, %v2090_v47  ;;  %v1773_v37 = vmul.f32 0.005, %v1709_v48  ;;  %v1419_v36 = vmul.f32 0.125, %v1315_v53  ;;  %vm1939_vm2 = vcmask 0  }
 0x630   :  { %v1899_v38 = vadd.f32 %v1898_v58, %v1772_v50  ;;  %v1710_v41 = vmul.f32 %v1418_v46, %v1418_v46  ;;  %v1317_v61 = vpop.f32.mrf.mxu0  ;;  %vm1527_vm8 = vcmp.eq.s32.totalorder %v1469_v44, %v2736_v10 }
 0x631   :  { %v1837_v30 = vsel %vm1517_vm3, %v1645_v54, %v1773_v37  ;;  %v2092_v0 = vadd.f32 -1.0, %v1419_v36  ;;  %v1711_v40 = vmul.f32 %v1419_v36, %v1419_v36  ;;  %v1420_v32 = vmul.f32 0.125, %v1317_v61 }
 0x632   :  { %v1774_v56 = vmul.f32 0.005, %v1710_v41  ;;  %v1900_v60 = vadd.f32 %v1899_v38, %v1837_v30  ;;  %v1319_v35 = vpop.f32.mrf.mxu0 }
 0x633   :  { %v1647_v2 = vmul.f32 %v2092_v0, %v2092_v0  ;;  %v1775_v3 = vmul.f32 0.005, %v1711_v40  ;;  %v1712_v4 = vmul.f32 %v1420_v32, %v1420_v32  ;;  %v1421_v5 = vmul.f32 0.125, %v1319_v35 }
 0x634   :  { %v1901_v6 = vadd.f32 %v1900_v60, %v1774_v56  ;;  %v1323_v7 = vpop.f32.mrf.mxu0  ;;  %v1470_v0 = vadd.s32 184, %v2698_v57 }
 0x635   :  { %v1776_v8 = vmul.f32 0.005, %v1712_v4  ;;  %v1839_v9 = vsel %vm1519_vm4, %v1647_v2, %v1775_v3  ;;  %v2094_v13 = vadd.f32 -1.0, %v1421_v5  ;;  %v1713_v16 = vmul.f32 %v1421_v5, %v1421_v5 }
 0x636   :  { %v1902_v17 = vadd.f32 %v1901_v6, %v1839_v9  ;;  %v1422_v20 = vmul.f32 0.125, %v1323_v7  ;;  %v1325_v22 = vpop.f32.mrf.mxu0  ;;  %vm1529_vm9 = vcmp.eq.s32.totalorder %v1470_v0, %v2736_v10  ;;  %v1471_v9 = vadd.s32 192, %v2698_v57 }
 0x637   :  { %v1649_v51 = vmul.f32 %v2094_v13, %v2094_v13  ;;  %v1777_v59 = vmul.f32 0.005, %v1713_v16  ;;  %v1423_v62 = vmul.f32 0.125, %v1325_v22 }
 0x638   :  { %v1903_v52 = vadd.f32 %v1902_v17, %v1776_v8  ;;  %v1714_v55 = vmul.f32 %v1422_v20, %v1422_v20  ;;  %v1327_v26 = vpop.f32.mrf.mxu0  ;;  %vm1531_vm10 = vcmp.eq.s32.totalorder %v1471_v9, %v2736_v10 }
 0x639   :  { %v1841_v63 = vsel %vm1521_vm5, %v1649_v51, %v1777_v59  ;;  %v2096_v11 = vadd.f32 -1.0, %v1423_v62  ;;  %v1715_v12 = vmul.f32 %v1423_v62, %v1423_v62  ;;  %v1424_v14 = vmul.f32 0.125, %v1327_v26 }
 0x63a   :  { %v1778_v15 = vmul.f32 0.005, %v1714_v55  ;;  %v1904_v18 = vadd.f32 %v1903_v52, %v1841_v63  ;;  %v1329_v19 = vpop.f32.mrf.mxu0 }
 0x63b   :  { %v1651_v23 = vmul.f32 %v2096_v11, %v2096_v11  ;;  %v1779_v25 = vmul.f32 0.005, %v1715_v12  ;;  %v1716_v27 = vmul.f32 %v1424_v14, %v1424_v14  ;;  %v1425_v28 = vmul.f32 0.125, %v1329_v19 }
 0x63c   :  { %v1905_v29 = vadd.f32 %v1904_v18, %v1778_v15  ;;  %v1333_v33 = vpop.f32.mrf.mxu0  ;;  %v1472_v11 = vadd.s32 200, %v2698_v57 }
 0x63d   :  { %v1780_v34 = vmul.f32 0.005, %v1716_v27  ;;  %v1843_v42 = vsel %vm1523_vm6, %v1651_v23, %v1779_v25  ;;  %v2098_v39 = vadd.f32 -1.0, %v1425_v28  ;;  %v1717_v45 = vmul.f32 %v1425_v28, %v1425_v28 }
 0x63e   :  { %v1906_v1 = vadd.f32 %v1905_v29, %v1843_v42  ;;  %v1426_v43 = vmul.f32 0.125, %v1333_v33  ;;  %v1335_v50 = vpop.f32.mrf.mxu0  ;;  %vm1533_vm11 = vcmp.eq.s32.totalorder %v1472_v11, %v2736_v10  ;;  %v1473_v42 = vadd.s32 208, %v2698_v57 }
 0x63f   :  { %v1653_v47 = vmul.f32 %v2098_v39, %v2098_v39  ;;  %v1781_v48 = vmul.f32 0.005, %v1717_v45  ;;  %v1427_v58 = vmul.f32 0.125, %v1335_v50 }
 0x640   :  { %v1907_v46 = vadd.f32 %v1906_v1, %v1780_v34  ;;  %v1718_v53 = vmul.f32 %v1426_v43, %v1426_v43  ;;  %v1337_v49 = vpop.f32.mrf.mxu0  ;;  %vm1535_vm12 = vcmp.eq.s32.totalorder %v1473_v42, %v2736_v10 }
 0x641   :  { %v1845_v54 = vsel %vm1525_vm7, %v1653_v47, %v1781_v48  ;;  %v2100_v37 = vadd.f32 -1.0, %v1427_v58  ;;  %v1719_v36 = vmul.f32 %v1427_v58, %v1427_v58  ;;  %v1428_v38 = vmul.f32 0.125, %v1337_v49 }
 0x642   :  { %v1782_v41 = vmul.f32 0.005, %v1718_v53  ;;  %v1908_v61 = vadd.f32 %v1907_v46, %v1845_v54  ;;  %v1339_v30 = vpop.f32.mrf.mxu0 }
 0x643   :  { %v1655_v40 = vmul.f32 %v2100_v37, %v2100_v37  ;;  %v1783_v32 = vmul.f32 0.005, %v1719_v36  ;;  %v1720_v56 = vmul.f32 %v1428_v38, %v1428_v38  ;;  %v1429_v60 = vmul.f32 0.125, %v1339_v30 }
 0x644   :  { %v1909_v35 = vadd.f32 %v1908_v61, %v1782_v41  ;;  %v1343_v31 = vpop.f32.mrf.mxu0  ;;  %v1474_v37 = vadd.s32 216, %v2698_v57 }
 0x645   :  { %v1784_v2 = vmul.f32 0.005, %v1720_v56  ;;  %v1847_v3 = vsel %vm1527_vm8, %v1655_v40, %v1783_v32  ;;  %v2102_v4 = vadd.f32 -1.0, %v1429_v60  ;;  %v1721_v5 = vmul.f32 %v1429_v60, %v1429_v60 }
 0x646   :  { %v1910_v6 = vadd.f32 %v1909_v35, %v1847_v3  ;;  %v1430_v7 = vmul.f32 0.125, %v1343_v31  ;;  %v1345_v8 = vpop.f32.mrf.mxu0  ;;  %vm1537_vm13 = vcmp.eq.s32.totalorder %v1474_v37, %v2736_v10  ;;  %v1475_v3 = vadd.s32 224, %v2698_v57 }
 0x647   :  { %v1657_v13 = vmul.f32 %v2102_v4, %v2102_v4  ;;  %v1785_v16 = vmul.f32 0.005, %v1721_v5  ;;  %v1431_v17 = vmul.f32 0.125, %v1345_v8 }
 0x648   :  { %v1911_v20 = vadd.f32 %v1910_v6, %v1784_v2  ;;  %v1722_v22 = vmul.f32 %v1430_v7, %v1430_v7  ;;  %v1347_v24 = vpop.f32.mrf.mxu0  ;;  %vm1539_vm14 = vcmp.eq.s32.totalorder %v1475_v3, %v2736_v10 }
 0x649   :  { %v1849_v51 = vsel %vm1529_vm9, %v1657_v13, %v1785_v16  ;;  %v2104_v59 = vadd.f32 -1.0, %v1431_v17  ;;  %v1723_v62 = vmul.f32 %v1431_v17, %v1431_v17  ;;  %v1432_v52 = vmul.f32 0.125, %v1347_v24 }
 0x64a   :  { %v1786_v55 = vmul.f32 0.005, %v1722_v22  ;;  %v1912_v26 = vadd.f32 %v1911_v20, %v1849_v51  ;;  %v1349_v63 = vpop.f32.mrf.mxu0 }
 0x64b   :  { %v1659_v12 = vmul.f32 %v2104_v59, %v2104_v59  ;;  %v1787_v14 = vmul.f32 0.005, %v1723_v62  ;;  %v1724_v15 = vmul.f32 %v1432_v52, %v1432_v52  ;;  %v1433_v18 = vmul.f32 0.125, %v1349_v63 }
 0x64c   :  { %v1913_v19 = vadd.f32 %v1912_v26, %v1786_v55  ;;  %v1353_v21 = vpop.f32.mrf.mxu0  ;;  %v1476_v59 = vadd.s32 232, %v2698_v57 }
 0x64d   :  { %v1788_v23 = vmul.f32 0.005, %v1724_v15  ;;  %v1851_v25 = vsel %vm1531_vm10, %v1659_v12, %v1787_v14  ;;  %v2106_v27 = vadd.f32 -1.0, %v1433_v18  ;;  %v1725_v28 = vmul.f32 %v1433_v18, %v1433_v18 }
 0x64e   :  { %v1914_v29 = vadd.f32 %v1913_v19, %v1851_v25  ;;  %v1434_v33 = vmul.f32 0.125, %v1353_v21  ;;  %v1355_v34 = vpop.f32.mrf.mxu0  ;;  %vm1541_vm15 = vcmp.eq.s32.totalorder %v1476_v59, %v2736_v10  ;;  %v1477_v25 = vadd.s32 240, %v2698_v57 }
 0x64f   :  { %v1661_v39 = vmul.f32 %v2106_v27, %v2106_v27  ;;  %v1789_v45 = vmul.f32 0.005, %v1725_v28  ;;  %v1435_v1 = vmul.f32 0.125, %v1355_v34 }
 0x650   :  { %v1915_v43 = vadd.f32 %v1914_v29, %v1788_v23  ;;  %v1726_v50 = vmul.f32 %v1434_v33, %v1434_v33  ;;  %v1357_v44 = vpop.f32.mrf.mxu0  ;;  %vm1543_vm0 = vcmp.eq.s32.totalorder %v1477_v25, %v2736_v10 }
 0x651   :  { %v1853_v47 = vsel %vm1533_vm11, %v1661_v39, %v1789_v45  ;;  %v2108_v48 = vadd.f32 -1.0, %v1435_v1  ;;  %v1727_v58 = vmul.f32 %v1435_v1, %v1435_v1  ;;  %v1436_v46 = vmul.f32 0.125, %v1357_v44 }
 0x652   :  { %v1790_v53 = vmul.f32 0.005, %v1726_v50  ;;  %v1916_v49 = vadd.f32 %v1915_v43, %v1853_v47  ;;  %v1359_v54 = vpop.f32.mrf.mxu0 }
 0x653   :  { %v1663_v36 = vmul.f32 %v2108_v48, %v2108_v48  ;;  %v1791_v38 = vmul.f32 0.005, %v1727_v58  ;;  %v1728_v41 = vmul.f32 %v1436_v46, %v1436_v46  ;;  %v1437_v61 = vmul.f32 0.125, %v1359_v54 }
 0x654   :  { %v1917_v30 = vadd.f32 %v1916_v49, %v1790_v53  ;;  %v1363_v0 = vpop.f32.mrf.mxu0  ;;  %v1478_v48 = vadd.s32 248, %v2698_v57 }
 0x655   :  { %v1792_v40 = vmul.f32 0.005, %v1728_v41  ;;  %v1855_v32 = vsel %vm1535_vm12, %v1663_v36, %v1791_v38  ;;  %v2110_v56 = vadd.f32 -1.0, %v1437_v61  ;;  %v1729_v60 = vmul.f32 %v1437_v61, %v1437_v61 }
 0x656   :  { %v1918_v35 = vadd.f32 %v1917_v30, %v1855_v32  ;;  %v1438_v31 = vmul.f32 0.125, %v1363_v0  ;;  %v1365_v2 = vpop.f32.mrf.mxu0  ;;  %vm1545_vm1 = vcmp.eq.s32.totalorder %v1478_v48, %v2736_v10 }
 0x657   :  { %v1665_v4 = vmul.f32 %v2110_v56, %v2110_v56  ;;  %v1793_v5 = vmul.f32 0.005, %v1729_v60  ;;  %v1439_v6 = vmul.f32 0.125, %v1365_v2 }
 0x658   :  { %v1919_v7 = vadd.f32 %v1918_v35, %v1792_v40  ;;  %v1730_v8 = vmul.f32 %v1438_v31, %v1438_v31  ;;  %v1367_v9 = vpop.f32.mrf.mxu0 }
 0x659   :  { %v1857_v13 = vsel %vm1537_vm13, %v1665_v4, %v1793_v5  ;;  %v2112_v16 = vadd.f32 -1.0, %v1439_v6  ;;  %v1731_v17 = vmul.f32 %v1439_v6, %v1439_v6  ;;  %v1440_v20 = vmul.f32 0.125, %v1367_v9 }
 0x65a   :  { %v1794_v22 = vmul.f32 0.005, %v1730_v8  ;;  %v1920_v24 = vadd.f32 %v1919_v7, %v1857_v13  ;;  %v1369_v51 = vpop.f32.mrf.mxu0 }
 0x65b   :  { %v1667_v62 = vmul.f32 %v2112_v16, %v2112_v16  ;;  %v1795_v52 = vmul.f32 0.005, %v1731_v17  ;;  %v1732_v55 = vmul.f32 %v1440_v20, %v1440_v20  ;;  %v1441_v26 = vmul.f32 0.125, %v1369_v51 }
 0x65c   :  { %v1921_v63 = vadd.f32 %v1920_v24, %v1794_v22  ;;  %v1373_v11 = vpop.f32.mrf.mxu0 }
 0x65d   :  { %v1796_v12 = vmul.f32 0.005, %v1732_v55  ;;  %v1859_v14 = vsel %vm1539_vm14, %v1667_v62, %v1795_v52  ;;  %v2114_v15 = vadd.f32 -1.0, %v1441_v26  ;;  %v1733_v18 = vmul.f32 %v1441_v26, %v1441_v26 }
 0x65e   :  { %v1922_v19 = vadd.f32 %v1921_v63, %v1859_v14  ;;  %v1442_v21 = vmul.f32 0.125, %v1373_v11  ;;  %v1375_v23 = vpop.f32.mrf.mxu0 }
 0x65f   :  { %v1669_v27 = vmul.f32 %v2114_v15, %v2114_v15  ;;  %v1797_v28 = vmul.f32 0.005, %v1733_v18  ;;  %v1443_v29 = vmul.f32 0.125, %v1375_v23 }
 0x660   :  { %v1923_v33 = vadd.f32 %v1922_v19, %v1796_v12  ;;  %v1734_v34 = vmul.f32 %v1442_v21, %v1442_v21  ;;  %v1377_v42 = vpop.f32.mrf.mxu0 }
 0x661   :  { %v1861_v39 = vsel %vm1541_vm15, %v1669_v27, %v1797_v28  ;;  %v2116_v45 = vadd.f32 -1.0, %v1443_v29  ;;  %v1735_v1 = vmul.f32 %v1443_v29, %v1443_v29  ;;  %v1444_v43 = vmul.f32 0.125, %v1377_v42 }
 0x662   :  { %v1798_v50 = vmul.f32 0.005, %v1734_v34  ;;  %v1924_v44 = vadd.f32 %v1923_v33, %v1861_v39  ;;  %v1379_v47 = vpop.f32.mrf.mxu0 }
 0x663   :  { %v1671_v58 = vmul.f32 %v2116_v45, %v2116_v45  ;;  %v1799_v46 = vmul.f32 0.005, %v1735_v1  ;;  %v1736_v53 = vmul.f32 %v1444_v43, %v1444_v43  ;;  %v1445_v49 = vmul.f32 0.125, %v1379_v47 }
 0x664   :  { %v1925_v54 = vadd.f32 %v1924_v44, %v1798_v50 }
 0x665   :  { %v1800_v37 = vmul.f32 0.005, %v1736_v53  ;;  %v2118_v36 = vadd.f32 -1.0, %v1445_v49  ;;  %v1737_v38 = vmul.f32 %v1445_v49, %v1445_v49  ;;  %v1863_v41 = vsel %vm1543_vm0, %v1671_v58, %v1799_v46 }
 0x666   :  { %v1926_v61 = vadd.f32 %v1925_v54, %v1863_v41 }
 0x667   :  { %v1673_v30 = vmul.f32 %v2118_v36, %v2118_v36  ;;  %v1801_v0 = vmul.f32 0.005, %v1737_v38 }
 0x668   :  { %v1927_v40 = vadd.f32 %v1926_v61, %v1800_v37 }
 0x669   :  { %v1865_v32 = vsel %vm1545_vm1, %v1673_v30, %v1801_v0 }
 0x66a   :  { %v1928_v56 = vadd.f32 %v1927_v40, %v1865_v32 }
 0x66c   :  { %1929 = vadd.xlane.f32.xlu1 %v1928_v56 }
 0x6f5   :  { %v1930_v57 = vpop.xlane.xlu1 %1929 }
 0x6f6   :  { %v1931_v60 = vrot.slane %v1930_v57, 4 }
 0x6f8   :  { %v1932_v35 = vadd.f32 %v1931_v60, %v1930_v57 }
 0x6fa   :  { %v1933_v31 = vrot.slane %v1932_v35, 2 }
 0x6fc   :  { %v1934_v2 = vadd.f32 %v1933_v31, %v1932_v35 }
 0x6fe   :  { %v1935_v3 = vrot.slane %v1934_v2, 1 }
 0x700   :  { %v1936_v4 = vadd.f32 %v1935_v3, %v1934_v2 }
 0x702   :  { %2119 = vpush %v1936_v4 }
 0x733   :  { %s2120_s17 = spop %2119 }
 0x734   :  { %v1938_v10 = vstv %s2120_s17 }
 0x735   :  { %1940 = vst.msk [vmem:[#allocation11] sm:$0x1] %vm1939_vm2, %v1938_v10 }
 0x736   :  { %2385 = shalt.err (!%p2382_p1)
}
 0x737   :  { %1950 = dma.vmem_to_hbm [thread:$0]  %s1948_s4, 16, %s2777_s5, [#allocation4]  }
 0x738   :  { %2400 = dma.done.wait [#allocation4], 16  }
 0x739   :  { %2401 = vsyncadd [#allocation4], 4294967280 }
 0x73a   :  { %1954 = vsyncpa [#allocation3], 1 }
 0x73b   :  { %1955 = vsyncpa [#allocation6], 1 }
 0x73c   :  { %1956 = vsyncpa [#allocation9], 1 }
 0x73d   :  { %1957 = vsyncpa [#allocation4], 1 }

</bundles_post_ra>
